<compile_context>
chip_gen: v7x
topology: tpu7x:2x2x1
jax: 0.10.0
libtpu: 0.0.40
codegen_flags: <defaults>
</compile_context>

<pallas_src>
import functools
import numpy as np

import jax
import jax.numpy as jnp
from jax import lax
from jax.experimental import pallas as pl
from jax.experimental.pallas import tpu as pltpu

F32 = jnp.float32
BF16 = jnp.bfloat16
VMEM = pltpu.MemorySpace.VMEM

LANE = 128


def _rup(n, m=LANE):
    return ((n + m - 1) // m) * m


def _pad2(a, rows, cols):
    return jnp.pad(a, ((0, rows - a.shape[0]), (0, cols - a.shape[1])))


# ----------------------------------------------------------------------------
# Fused per-layer Pallas kernel:
#   gcn_norm + GCNConv + ReLU + GraphNorm + EdgePooling edge score
# ----------------------------------------------------------------------------

def _layer_kernel(adjt_ref, sladd_ref, x_ref, mem_ref, memT_ref,
                  w_ref, b_ref, gn_ref, epw_ref,
                  y_ref, score_ref):
    adjt = adjt_ref[...]                    # (N, N) symmetric 0/1 adjacency
    sl_add = sladd_ref[...]                 # (N, 1) remaining self-loops to add

    # ---- gcn_norm folded into the feature side (no (N,N) temporaries).
    deg = jnp.sum(adjt, axis=1, keepdims=True) + sl_add          # deg w/ self loops
    dinv = jnp.where(deg > 0.0, lax.rsqrt(deg), 0.0)              # (N, 1)

    # ---- GCNConv + ReLU: h = relu(dinv * (A_sl @ (dinv * (x @ W))) + b)
    xw = jnp.dot(x_ref[...].astype(BF16), w_ref[...].astype(BF16),
                 preferred_element_type=F32)                      # (N, Cp)
    xw_s = xw * dinv                                              # src-side scale
    agg = jnp.dot(adjt.astype(BF16), xw_s.astype(BF16),
                  preferred_element_type=F32) + sl_add * xw_s     # + self loop
    h = jnp.maximum(dinv * agg + b_ref[...], 0.0)                 # (N, Cp)

    # ---- GraphNorm: fused stats (one matmul for [mean, E[h^2]], one broadcast).
    mem = mem_ref[...]                                            # (Gd, N) one-hot
    memT = memT_ref[...]                                          # (N, Gd)
    counts = jnp.sum(mem, axis=1, keepdims=True)                  # (Gd, 1)
    invc = 1.0 / jnp.maximum(counts, 1.0)
    gn = gn_ref[...]                                              # (3, Cp)
    gn_w, gn_b, gn_ms = gn[0:1, :], gn[1:2, :], gn[2:3, :]
    Cp = h.shape[1]
    hh = jnp.concatenate([h, h * h], axis=1)                      # (N, 2Cp)
    stats = jnp.dot(mem, hh, preferred_element_type=F32) * invc   # (Gd, 2Cp)
    mean = stats[:, :Cp]
    ex2 = stats[:, Cp:]
    # var = E[(h - ms*mean)^2] = E[h^2] - ms*(2-ms)*mean^2 (clamped vs cancellation)
    var = jnp.maximum(ex2 - gn_ms * (2.0 - gn_ms) * mean * mean, 0.0)
    istd = lax.rsqrt(var + 1e-5)
    bc = jnp.dot(memT, jnp.concatenate([mean, istd], axis=1),
                 preferred_element_type=F32)                      # (N, 2Cp)
    mean_n = bc[:, :Cp]
    istd_n = bc[:, Cp:]
    y = gn_w * (h - gn_ms * mean_n) * istd_n + gn_b
    y_ref[...] = y

    # ---- EdgePooling score.  softmax is grouped by dst, so the dst term and the
    #      bias are constant within a group and cancel exactly -> only the src
    #      term matters.  Emitted as score[src, dst]; per-dst softmax is a
    #      per-column (sublane) reduction, masked by the symmetric adjacency.
    s_src = jnp.dot(y, epw_ref[...], preferred_element_type=F32)  # (N, 1) f32 matvec
    is_edge = adjt > 0.5
    raw = jnp.where(is_edge, s_src, -1e30)                        # (N, N)
    cmax = jnp.max(raw, axis=0, keepdims=True)                    # (1, N) per-dst max
    ex = jnp.where(is_edge, jnp.exp(raw - cmax), 0.0)
    inv_den = 1.0 / (jnp.sum(ex, axis=0, keepdims=True) + 1e-16)  # exact reciprocal
    score_ref[...] = jnp.where(is_edge, ex * inv_den + 0.5, 0.0)


def fused_layer(adj_t, sl_add, x, mem, memT, pp, l):
    N = x.shape[0]
    c_out = pp[f"gcn{l}_w"].shape[1]            # lane-padded width
    return pl.pallas_call(
        _layer_kernel,
        out_shape=(jax.ShapeDtypeStruct((N, c_out), F32),   # GraphNorm output
                   jax.ShapeDtypeStruct((N, N), F32)),       # edge score[src, dst]
        in_specs=[pl.BlockSpec(memory_space=VMEM)] * 9,
        out_specs=(pl.BlockSpec(memory_space=VMEM),
                   pl.BlockSpec(memory_space=VMEM)),
    )(adj_t, sl_add, x, mem, memT,
      pp[f"gcn{l}_w"], pp[f"gcn{l}_b"], pp[f"gn{l}_pack"], pp[f"ep{l}_w"])


# ----------------------------------------------------------------------------
# Head kernel: global mean+max pool -> Linear (BN folded) -> Linear -> softmax
# ----------------------------------------------------------------------------

def _head_kernel(x_ref, mem_ref, memT_ref, w1_ref, b1_ref, w2_ref, b2_ref,
                 logit_ref, prob_ref):
    x = x_ref[...]                                        # (N, C)
    mem = mem_ref[...]                                    # (G, N)
    memT = memT_ref[...]                                  # (N, G)
    counts = jnp.sum(mem, axis=1, keepdims=True)          # (G, 1)
    invc = 1.0 / jnp.maximum(counts, 1.0)
    v_mean = jnp.dot(mem, x, preferred_element_type=F32) * invc          # (G, C)
    # per-graph max pool: static unrolled loop, no (N, G, C) broadcast
    G = mem.shape[0]
    rows = []
    for g in range(G):
        m = memT[:, g:g + 1] > 0.5                                       # (N, 1)
        rows.append(jnp.max(jnp.where(m, x, -1e30), axis=0, keepdims=True))
    v_max = jnp.concatenate(rows, axis=0)                                # (G, C)
    v_max = jnp.where(counts > 0.0, v_max, 0.0)           # neutralize empty slots
    v = v_mean + v_max
    h = jnp.dot(v.astype(BF16), w1_ref[...].astype(BF16),
                preferred_element_type=F32) + b1_ref[...]   # Linear + BN(eval) folded
    logits = jnp.dot(h.astype(BF16), w2_ref[...].astype(BF16),
                     preferred_element_type=F32) + b2_ref[...]
    m = jnp.max(logits, axis=1, keepdims=True)
    e = jnp.exp(logits - m)
    prob = e / jnp.sum(e, axis=1, keepdims=True)          # exact div: rows sum to 1
    logit_ref[...] = logits
    prob_ref[...] = prob


def head(x, mem, memT, pp):
    G = mem.shape[0]
    L = pp["cls_w"].shape[1]
    return pl.pallas_call(
        _head_kernel,
        out_shape=(jax.ShapeDtypeStruct((G, L), F32),
                   jax.ShapeDtypeStruct((G, L), F32)),
        in_specs=[pl.BlockSpec(memory_space=VMEM)] * 7,
        out_specs=(pl.BlockSpec(memory_space=VMEM),
                   pl.BlockSpec(memory_space=VMEM)),
    )(x, mem, memT, pp["head_w1"], pp["head_b1"], pp["cls_w"], pp["cls_b"])


# ----------------------------------------------------------------------------
# Plain-JAX glue (graph bookkeeping, data-dependent coarsening)
# ----------------------------------------------------------------------------

def build_norm_groups(batch, node_valid, num_graphs):
    # one-hot membership incl. a dummy group for padded/invalid node slots
    batch_eff = jnp.where(node_valid, batch, num_graphs)
    memT = jax.nn.one_hot(batch_eff, num_graphs + 1, dtype=F32)   # (N, G+1)
    return memT.T, memT


def build_pool_groups(batch, node_valid, num_graphs):
    batch_eff = jnp.where(node_valid, batch, num_graphs)
    memT_full = jax.nn.one_hot(batch_eff, num_graphs + 1, dtype=F32)
    return memT_full.T[:num_graphs], memT_full[:, :num_graphs]


def edge_merge(x, score_st, adj_t, node_valid, batch, num_graphs):
    # TODO(synk): EdgePooling's greedy, data-dependent edge contraction has no
    # clean Pallas equivalent; it stays in plain JAX under the same jit.  The
    # sequential loop is bounded by the dynamic number of real edges, but at toy
    # sizes this loop (plus launch overhead) dominates wall time, not the kernels.
    N, C = x.shape
    E = N * N
    score_flat = score_st.reshape(E)                      # score_st[src, dst]
    valid_e = score_flat > 0.25          # real edges carry softmax(+0.5) >= 0.5
    score_f = jnp.where(valid_e, score_flat, -jnp.inf)
    order = jnp.argsort(-score_f)
    src_all = (jnp.arange(E, dtype=jnp.int32) // N)
    dst_all = (jnp.arange(E, dtype=jnp.int32) % N)
    n_edges = jnp.sum(valid_e.astype(jnp.int32))

    def body(k, carry):
        avail, cluster, cscore, cnt = carry
        e = order[k]
        s, d = src_all[e], dst_all[e]
        ok = valid_e[e] & avail[s] & avail[d]
        cluster = cluster.at[s].set(jnp.where(ok, cnt, cluster[s]))
        cluster = cluster.at[d].set(jnp.where(ok, cnt, cluster[d]))
        avail = avail.at[s].set(avail[s] & jnp.logical_not(ok))
        avail = avail.at[d].set(avail[d] & jnp.logical_not(ok))
        cscore = cscore.at[cnt].set(jnp.where(ok, score_f[e].astype(F32), cscore[cnt]))
        cnt = cnt + ok.astype(jnp.int32)
        return avail, cluster, cscore, cnt

    init = (node_valid, jnp.zeros((N,), jnp.int32), jnp.ones((N,), F32),
            jnp.int32(0))
    avail, cluster, cscore, cnt = lax.fori_loop(0, n_edges, body, init)

    rem = avail & node_valid                              # untouched nodes kept as-is
    rank = jnp.cumsum(rem.astype(jnp.int32)) - 1
    cluster = jnp.where(rem, cnt + rank, cluster)
    n_new = cnt + jnp.sum(rem.astype(jnp.int32))

    xm = jnp.where(node_valid[:, None], x, 0.0)
    new_x = jnp.zeros((N, C), F32).at[cluster].add(xm) * cscore[:, None]
    new_valid = jnp.arange(N, dtype=jnp.int32) < n_new

    new_batch = jnp.full((N,), num_graphs, jnp.int32)
    tgt = jnp.where(node_valid, cluster, N)
    new_batch = new_batch.at[tgt].set(batch, mode="drop")

    es = jnp.where(valid_e, cluster[src_all], N)
    ed = jnp.where(valid_e, cluster[dst_all], N)
    new_adj_t = jnp.zeros((N, N), F32).at[ed, es].set(1.0, mode="drop")
    return new_x, new_adj_t, new_batch, new_valid


def forward(pp, x, adj_t, batch, num_graphs):
    N = x.shape[0]
    node_valid = jnp.ones((N,), bool)
    for l in range(3):
        # remaining self loops (add_remaining_self_loops): O(N) plain JAX
        sl_add = (node_valid.astype(F32) * (1.0 - jnp.diagonal(adj_t)))[:, None]
        mem, memT = build_norm_groups(batch, node_valid, num_graphs)
        x, score_st = fused_layer(adj_t, sl_add, x, mem, memT, pp, l)
        x, adj_t, batch, node_valid = edge_merge(x, score_st, adj_t, node_valid,
                                                 batch, num_graphs)
    mem, memT = build_pool_groups(batch, node_valid, num_graphs)
    return head(x, mem, memT, pp)


# ----------------------------------------------------------------------------
# Deterministic parameter init (torch-module layout) + kernel-layout packing
# ----------------------------------------------------------------------------

def init_params(key, num_features, num_labels):
    C1, C2, C3, H = (2 * num_features, 4 * num_features,
                     8 * num_features, 16 * num_features)

    def lin(k, fi, fo):
        k1, k2 = jax.random.split(k)
        bnd = 1.0 / np.sqrt(fi)
        W = jax.random.uniform(k1, (fi, fo), F32, -bnd, bnd)
        b = jax.random.uniform(k2, (1, fo), F32, -bnd, bnd)
        return W, b

    keys = jax.random.split(key, 8)
    p = {}
    for l, (ci, co) in enumerate([(num_features, C1), (C1, C2), (C2, C3)]):
        W, b = lin(keys[l], ci, co)
        p[f"gcn{l}_w"], p[f"gcn{l}_b"] = W, b
        p[f"gn{l}_w"] = jnp.ones((1, co), F32)
        p[f"gn{l}_b"] = jnp.zeros((1, co), F32)
        p[f"gn{l}_ms"] = jnp.ones((1, co), F32)           # GraphNorm mean_scale
        We, be = lin(keys[3 + l], 2 * co, 1)              # EdgePooling lin(2C -> 1)
        p[f"ep{l}_we"] = We                               # (2C, 1)
        p[f"ep{l}_b"] = be                                # (1, 1) (cancels in softmax)
    p["lin_w"], p["lin_b"] = lin(keys[6], C3, H)
    p["bn_gamma"] = jnp.ones((1, H), F32)
    p["bn_beta"] = jnp.zeros((1, H), F32)
    p["bn_rm"] = jnp.zeros((1, H), F32)
    p["bn_rv"] = jnp.ones((1, H), F32)
    p["cls_w"], p["cls_b"] = lin(keys[7], H, num_labels)
    return p


def pack_params(p, num_features):
    """One-time host-side packing into kernel-friendly, lane-padded slabs (eval)."""
    pp = {}
    c_outs = [2 * num_features, 4 * num_features, 8 * num_features]
    c_ins = [num_features, _rup(c_outs[0]), _rup(c_outs[1])]   # layer l input width
    for l in range(3):
        co = c_outs[l]
        ci_p, co_p = c_ins[l], _rup(co)
        # GCNConv weight/bias: zero-pad so padded channels stay exactly 0.
        pp[f"gcn{l}_w"] = _pad2(p[f"gcn{l}_w"], ci_p, co_p)
        pp[f"gcn{l}_b"] = _pad2(p[f"gcn{l}_b"], 1, co_p)
        gn = jnp.concatenate([p[f"gn{l}_w"], p[f"gn{l}_b"], p[f"gn{l}_ms"]], axis=0)
        pp[f"gn{l}_pack"] = _pad2(gn, 3, co_p)                  # (3, Cp)
        # EdgePooling: only the src half of lin(2C->1) is needed (dst term and
        # bias cancel in the per-dst softmax).
        We = p[f"ep{l}_we"]
        pp[f"ep{l}_w"] = _pad2(We[:co], co_p, 1)                # (Cp, 1)
    # Fold eval-mode BatchNorm1d into the first head Linear.
    scale = p["bn_gamma"] * lax.rsqrt(p["bn_rv"] + 1e-5)
    w1 = p["lin_w"] * scale
    b1 = (p["lin_b"] - p["bn_rm"]) * scale + p["bn_beta"]
    pp["head_w1"] = _pad2(w1, _rup(c_outs[2]), w1.shape[1])     # pad in-dim only
    pp["head_b1"] = b1
    pp["cls_w"] = p["cls_w"]
    pp["cls_b"] = p["cls_b"]
    return pp


# ----------------------------------------------------------------------------

if __name__ == "__main__":
    NUM_FEATURES, NUM_LABELS, N_NODES, NUM_GRAPHS = 8, 4, 16, 2

    key = jax.random.PRNGKey(0)
    kx, kp = jax.random.split(key)
    params = init_params(kp, NUM_FEATURES, NUM_LABELS)
    pp = pack_params(params, NUM_FEATURES)

    x = jax.random.normal(kx, (N_NODES, NUM_FEATURES), F32)
    batch = jnp.array([0] * 8 + [1] * 8, jnp.int32)

    # two graphs of 8 nodes: undirected ring + two chords each (symmetric)
    src_list, dst_list = [], []
    for g in range(NUM_GRAPHS):
        base = g * 8
        pairs = [(i, (i + 1) % 8) for i in range(8)] + [(0, 4), (1, 5)]
        for a, c in pairs:
            src_list += [base + a, base + c]
            dst_list += [base + c, base + a]
    edge_index = jnp.array([src_list, dst_list], jnp.int32)        # (2, 40)
    # dense adjacency adj_t[dst, src] (symmetric here)
    adj_t = jnp.zeros((N_NODES, N_NODES), F32).at[edge_index[1], edge_index[0]].set(1.0)

    fwd = jax.jit(functools.partial(forward, num_graphs=NUM_GRAPHS))
    logits, probs = fwd(pp, x, adj_t, batch)
    jax.block_until_ready((logits, probs))

    assert logits.shape == (NUM_GRAPHS, NUM_LABELS)
    assert probs.shape == (NUM_GRAPHS, NUM_LABELS)
    assert bool(jnp.all(jnp.isfinite(logits))) and bool(jnp.all(jnp.isfinite(probs)))
    assert bool(jnp.allclose(jnp.sum(probs, axis=1), 1.0, atol=1e-4))
    print("KERNEL_OK")
</pallas_src>

<mosaic_0001>
module attributes {stable_mosaic.version = 11 : i64} {
  func.func @_layer_kernel(%arg0: memref<16x16xf32, #tpu.memory_space<vmem>>, %arg1: memref<16x1xf32, #tpu.memory_space<vmem>>, %arg2: memref<16x8xf32, #tpu.memory_space<vmem>>, %arg3: memref<3x16xf32, #tpu.memory_space<vmem>>, %arg4: memref<16x3xf32, #tpu.memory_space<vmem>>, %arg5: memref<8x128xf32, #tpu.memory_space<vmem>>, %arg6: memref<1x128xf32, #tpu.memory_space<vmem>>, %arg7: memref<3x128xf32, #tpu.memory_space<vmem>>, %arg8: memref<128x1xf32, #tpu.memory_space<vmem>>, %arg9: memref<16x128xf32, #tpu.memory_space<vmem>>, %arg10: memref<16x16xf32, #tpu.memory_space<vmem>>) attributes {dimension_semantics = [], scalar_prefetch = 0 : i64, scratch_operands = 0 : i64, tpu.core_type = #tpu.core_type<tc>} {
    %c0 = arith.constant 0 : index
    %c0_0 = arith.constant 0 : index
    %0 = vector.load %arg0[%c0, %c0_0] : memref<16x16xf32, #tpu.memory_space<vmem>>, vector<16x16xf32>
    %c0_1 = arith.constant 0 : index
    %c0_2 = arith.constant 0 : index
    %1 = vector.load %arg1[%c0_1, %c0_2] : memref<16x1xf32, #tpu.memory_space<vmem>>, vector<16x1xf32>
    %cst = arith.constant dense<0.000000e+00> : vector<16xf32>
    %2 = vector.multi_reduction <add>, %0, %cst [1] : vector<16x16xf32> to vector<16xf32>
    %3 = vector.shape_cast %2 : vector<16xf32> to vector<16x1xf32>
    %4 = arith.addf %3, %1 : vector<16x1xf32>
    %cst_3 = arith.constant 0.000000e+00 : f32
    %5 = vector.broadcast %cst_3 : f32 to vector<16x1xf32>
    %6 = arith.cmpf ogt, %4, %5 : vector<16x1xf32>
    %7 = math.rsqrt %4 : vector<16x1xf32>
    %cst_4 = arith.constant 0.000000e+00 : f32
    %8 = vector.broadcast %cst_4 : f32 to vector<16x1xf32>
    %9 = arith.select %6, %7, %8 : vector<16x1xi1>, vector<16x1xf32>
    %c0_5 = arith.constant 0 : index
    %c0_6 = arith.constant 0 : index
    %10 = vector.load %arg2[%c0_5, %c0_6] : memref<16x8xf32, #tpu.memory_space<vmem>>, vector<16x8xf32>
    %11 = arith.truncf %10 : vector<16x8xf32> to vector<16x8xbf16>
    %c0_7 = arith.constant 0 : index
    %c0_8 = arith.constant 0 : index
    %12 = vector.load %arg5[%c0_7, %c0_8] : memref<8x128xf32, #tpu.memory_space<vmem>>, vector<8x128xf32>
    %13 = arith.truncf %12 : vector<8x128xf32> to vector<8x128xbf16>
    %cst_9 = arith.constant dense<0.000000e+00> : vector<16x128xf32>
    %14 = tpu.matmul %11, %13, %cst_9 {dimension_numbers = #tpu.dot_dimension_numbers<[1], [0], [0], [1], [0, 0, 1, 1], [], []>} : vector<16x8xbf16>, vector<8x128xbf16>, vector<16x128xf32> -> vector<16x128xf32>
    %15 = vector.broadcast %9 : vector<16x1xf32> to vector<16x128xf32>
    %16 = arith.mulf %14, %15 : vector<16x128xf32>
    %17 = arith.truncf %0 : vector<16x16xf32> to vector<16x16xbf16>
    %18 = arith.truncf %16 : vector<16x128xf32> to vector<16x128xbf16>
    %cst_10 = arith.constant dense<0.000000e+00> : vector<16x128xf32>
    %19 = tpu.matmul %17, %18, %cst_10 {dimension_numbers = #tpu.dot_dimension_numbers<[1], [0], [0], [1], [0, 0, 1, 1], [], []>} : vector<16x16xbf16>, vector<16x128xbf16>, vector<16x128xf32> -> vector<16x128xf32>
    %20 = vector.broadcast %1 : vector<16x1xf32> to vector<16x128xf32>
    %21 = arith.mulf %20, %16 : vector<16x128xf32>
    %22 = arith.addf %19, %21 : vector<16x128xf32>
    %23 = vector.broadcast %9 : vector<16x1xf32> to vector<16x128xf32>
    %24 = arith.mulf %23, %22 : vector<16x128xf32>
    %c0_11 = arith.constant 0 : index
    %c0_12 = arith.constant 0 : index
    %25 = vector.load %arg6[%c0_11, %c0_12] : memref<1x128xf32, #tpu.memory_space<vmem>>, vector<1x128xf32>
    %26 = vector.broadcast %25 : vector<1x128xf32> to vector<16x128xf32>
    %27 = arith.addf %24, %26 : vector<16x128xf32>
    %cst_13 = arith.constant 0.000000e+00 : f32
    %28 = vector.broadcast %cst_13 : f32 to vector<16x128xf32>
    %29 = arith.maximumf %27, %28 : vector<16x128xf32>
    %c0_14 = arith.constant 0 : index
    %c0_15 = arith.constant 0 : index
    %30 = vector.load %arg3[%c0_14, %c0_15] : memref<3x16xf32, #tpu.memory_space<vmem>>, vector<3x16xf32>
    %c0_16 = arith.constant 0 : index
    %c0_17 = arith.constant 0 : index
    %31 = vector.load %arg4[%c0_16, %c0_17] : memref<16x3xf32, #tpu.memory_space<vmem>>, vector<16x3xf32>
    %cst_18 = arith.constant dense<0.000000e+00> : vector<3xf32>
    %32 = vector.multi_reduction <add>, %30, %cst_18 [1] : vector<3x16xf32> to vector<3xf32>
    %33 = vector.shape_cast %32 : vector<3xf32> to vector<3x1xf32>
    %cst_19 = arith.constant 1.000000e+00 : f32
    %34 = vector.broadcast %cst_19 : f32 to vector<3x1xf32>
    %35 = arith.maximumf %33, %34 : vector<3x1xf32>
    %cst_20 = arith.constant 1.000000e+00 : f32
    %36 = vector.broadcast %cst_20 : f32 to vector<3x1xf32>
    %37 = arith.divf %36, %35 : vector<3x1xf32>
    %c0_21 = arith.constant 0 : index
    %c0_22 = arith.constant 0 : index
    %38 = vector.load %arg7[%c0_21, %c0_22] : memref<3x128xf32, #tpu.memory_space<vmem>>, vector<3x128xf32>
    %39 = vector.extract_strided_slice %38 {offsets = [0, 0], sizes = [1, 128], strides = [1, 1]} : vector<3x128xf32> to vector<1x128xf32>
    %40 = vector.extract_strided_slice %38 {offsets = [1, 0], sizes = [1, 128], strides = [1, 1]} : vector<3x128xf32> to vector<1x128xf32>
    %41 = vector.extract_strided_slice %38 {offsets = [2, 0], sizes = [1, 128], strides = [1, 1]} : vector<3x128xf32> to vector<1x128xf32>
    %42 = arith.mulf %29, %29 : vector<16x128xf32>
    %43 = tpu.concatenate %29, %42 in 1 : vector<16x128xf32>, vector<16x128xf32> -> vector<16x256xf32>
    %cst_23 = arith.constant dense<0.000000e+00> : vector<3x256xf32>
    %44 = tpu.matmul %30, %43, %cst_23 {dimension_numbers = #tpu.dot_dimension_numbers<[1], [0], [0], [1], [0, 0, 1, 1], [], []>} : vector<3x16xf32>, vector<16x256xf32>, vector<3x256xf32> -> vector<3x256xf32>
    %45 = vector.broadcast %37 : vector<3x1xf32> to vector<3x256xf32>
    %46 = arith.mulf %44, %45 : vector<3x256xf32>
    %47 = vector.extract_strided_slice %46 {offsets = [0, 0], sizes = [3, 128], strides = [1, 1]} : vector<3x256xf32> to vector<3x128xf32>
    %48 = vector.extract_strided_slice %46 {offsets = [0, 128], sizes = [3, 128], strides = [1, 1]} : vector<3x256xf32> to vector<3x128xf32>
    %cst_24 = arith.constant 2.000000e+00 : f32
    %49 = vector.broadcast %cst_24 : f32 to vector<1x128xf32>
    %50 = arith.subf %49, %41 : vector<1x128xf32>
    %51 = arith.mulf %41, %50 : vector<1x128xf32>
    %52 = vector.broadcast %51 : vector<1x128xf32> to vector<3x128xf32>
    %53 = arith.mulf %52, %47 : vector<3x128xf32>
    %54 = arith.mulf %53, %47 : vector<3x128xf32>
    %55 = arith.subf %48, %54 : vector<3x128xf32>
    %cst_25 = arith.constant 0.000000e+00 : f32
    %56 = vector.broadcast %cst_25 : f32 to vector<3x128xf32>
    %57 = arith.maximumf %55, %56 : vector<3x128xf32>
    %cst_26 = arith.constant 9.99999974E-6 : f32
    %58 = vector.broadcast %cst_26 : f32 to vector<3x128xf32>
    %59 = arith.addf %57, %58 : vector<3x128xf32>
    %60 = math.rsqrt %59 : vector<3x128xf32>
    %61 = tpu.concatenate %47, %60 in 1 : vector<3x128xf32>, vector<3x128xf32> -> vector<3x256xf32>
    %cst_27 = arith.constant dense<0.000000e+00> : vector<16x256xf32>
    %62 = tpu.matmul %31, %61, %cst_27 {dimension_numbers = #tpu.dot_dimension_numbers<[1], [0], [0], [1], [0, 0, 1, 1], [], []>} : vector<16x3xf32>, vector<3x256xf32>, vector<16x256xf32> -> vector<16x256xf32>
    %63 = vector.extract_strided_slice %62 {offsets = [0, 0], sizes = [16, 128], strides = [1, 1]} : vector<16x256xf32> to vector<16x128xf32>
    %64 = vector.extract_strided_slice %62 {offsets = [0, 128], sizes = [16, 128], strides = [1, 1]} : vector<16x256xf32> to vector<16x128xf32>
    %65 = vector.broadcast %41 : vector<1x128xf32> to vector<16x128xf32>
    %66 = arith.mulf %65, %63 : vector<16x128xf32>
    %67 = arith.subf %29, %66 : vector<16x128xf32>
    %68 = vector.broadcast %39 : vector<1x128xf32> to vector<16x128xf32>
    %69 = arith.mulf %68, %67 : vector<16x128xf32>
    %70 = arith.mulf %69, %64 : vector<16x128xf32>
    %71 = vector.broadcast %40 : vector<1x128xf32> to vector<16x128xf32>
    %72 = arith.addf %70, %71 : vector<16x128xf32>
    %c0_28 = arith.constant 0 : index
    %c0_29 = arith.constant 0 : index
    %73 = vector.load %arg9[%c0_28, %c0_29] : memref<16x128xf32, #tpu.memory_space<vmem>>, vector<16x128xf32>
    tpu.vector_store %arg9[%c0_28, %c0_29], %72 {strides = array<i32>} : memref<16x128xf32, #tpu.memory_space<vmem>>, vector<16x128xf32>,
    %c0_30 = arith.constant 0 : index
    %c0_31 = arith.constant 0 : index
    %74 = vector.load %arg8[%c0_30, %c0_31] : memref<128x1xf32, #tpu.memory_space<vmem>>, vector<128x1xf32>
    %cst_32 = arith.constant dense<0.000000e+00> : vector<16x1xf32>
    %75 = tpu.matmul %72, %74, %cst_32 {dimension_numbers = #tpu.dot_dimension_numbers<[1], [0], [0], [1], [0, 0, 1, 1], [], []>} : vector<16x128xf32>, vector<128x1xf32>, vector<16x1xf32> -> vector<16x1xf32>
    %cst_33 = arith.constant 5.000000e-01 : f32
    %76 = vector.broadcast %cst_33 : f32 to vector<16x16xf32>
    %77 = arith.cmpf ogt, %0, %76 : vector<16x16xf32>
    %cst_34 = arith.constant -1.000000e+30 : f32
    %78 = vector.shape_cast %75 : vector<16x1xf32> to vector<16x1xf32>
    %79 = vector.broadcast %78 : vector<16x1xf32> to vector<16x16xf32>
    %80 = vector.broadcast %cst_34 : f32 to vector<16x16xf32>
    %81 = arith.select %77, %79, %80 : vector<16x16xi1>, vector<16x16xf32>
    %cst_35 = arith.constant dense<0xFF800000> : vector<16xf32>
    %82 = vector.multi_reduction <maximumf>, %81, %cst_35 [0] : vector<16x16xf32> to vector<16xf32>
    %83 = vector.shape_cast %82 : vector<16xf32> to vector<1x16xf32>
    %84 = vector.broadcast %83 : vector<1x16xf32> to vector<16x16xf32>
    %85 = arith.subf %81, %84 : vector<16x16xf32>
    %86 = math.exp %85 : vector<16x16xf32>
    %cst_36 = arith.constant 0.000000e+00 : f32
    %87 = vector.broadcast %cst_36 : f32 to vector<16x16xf32>
    %88 = arith.select %77, %86, %87 : vector<16x16xi1>, vector<16x16xf32>
    %cst_37 = arith.constant dense<0.000000e+00> : vector<16xf32>
    %89 = vector.multi_reduction <add>, %88, %cst_37 [0] : vector<16x16xf32> to vector<16xf32>
    %90 = vector.shape_cast %89 : vector<16xf32> to vector<1x16xf32>
    %cst_38 = arith.constant 1.000000e-16 : f32
    %91 = vector.broadcast %cst_38 : f32 to vector<1x16xf32>
    %92 = arith.addf %90, %91 : vector<1x16xf32>
    %cst_39 = arith.constant 1.000000e+00 : f32
    %93 = vector.broadcast %cst_39 : f32 to vector<1x16xf32>
    %94 = arith.divf %93, %92 : vector<1x16xf32>
    %95 = vector.broadcast %94 : vector<1x16xf32> to vector<16x16xf32>
    %96 = arith.mulf %88, %95 : vector<16x16xf32>
    %cst_40 = arith.constant 5.000000e-01 : f32
    %97 = vector.broadcast %cst_40 : f32 to vector<16x16xf32>
    %98 = arith.addf %96, %97 : vector<16x16xf32>
    %cst_41 = arith.constant 0.000000e+00 : f32
    %99 = vector.broadcast %cst_41 : f32 to vector<16x16xf32>
    %100 = arith.select %77, %98, %99 : vector<16x16xi1>, vector<16x16xf32>
    %c0_42 = arith.constant 0 : index
    %c0_43 = arith.constant 0 : index
    %101 = vector.load %arg10[%c0_42, %c0_43] : memref<16x16xf32, #tpu.memory_space<vmem>>, vector<16x16xf32>
    tpu.vector_store %arg10[%c0_42, %c0_43], %100 {strides = array<i32>} : memref<16x16xf32, #tpu.memory_space<vmem>>, vector<16x16xf32>,
    return
  }
}

module attributes {stable_mosaic.version = 11 : i64} {
  func.func @_layer_kernel(%arg0: memref<16x16xf32, #tpu.memory_space<vmem>>, %arg1: memref<16x1xf32, #tpu.memory_space<vmem>>, %arg2: memref<16x128xf32, #tpu.memory_space<vmem>>, %arg3: memref<3x16xf32, #tpu.memory_space<vmem>>, %arg4: memref<16x3xf32, #tpu.memory_space<vmem>>, %arg5: memref<128x128xf32, #tpu.memory_space<vmem>>, %arg6: memref<1x128xf32, #tpu.memory_space<vmem>>, %arg7: memref<3x128xf32, #tpu.memory_space<vmem>>, %arg8: memref<128x1xf32, #tpu.memory_space<vmem>>, %arg9: memref<16x128xf32, #tpu.memory_space<vmem>>, %arg10: memref<16x16xf32, #tpu.memory_space<vmem>>) attributes {dimension_semantics = [], scalar_prefetch = 0 : i64, scratch_operands = 0 : i64, tpu.core_type = #tpu.core_type<tc>} {
    %c0 = arith.constant 0 : index
    %c0_0 = arith.constant 0 : index
    %0 = vector.load %arg0[%c0, %c0_0] : memref<16x16xf32, #tpu.memory_space<vmem>>, vector<16x16xf32>
    %c0_1 = arith.constant 0 : index
    %c0_2 = arith.constant 0 : index
    %1 = vector.load %arg1[%c0_1, %c0_2] : memref<16x1xf32, #tpu.memory_space<vmem>>, vector<16x1xf32>
    %cst = arith.constant dense<0.000000e+00> : vector<16xf32>
    %2 = vector.multi_reduction <add>, %0, %cst [1] : vector<16x16xf32> to vector<16xf32>
    %3 = vector.shape_cast %2 : vector<16xf32> to vector<16x1xf32>
    %4 = arith.addf %3, %1 : vector<16x1xf32>
    %cst_3 = arith.constant 0.000000e+00 : f32
    %5 = vector.broadcast %cst_3 : f32 to vector<16x1xf32>
    %6 = arith.cmpf ogt, %4, %5 : vector<16x1xf32>
    %7 = math.rsqrt %4 : vector<16x1xf32>
    %cst_4 = arith.constant 0.000000e+00 : f32
    %8 = vector.broadcast %cst_4 : f32 to vector<16x1xf32>
    %9 = arith.select %6, %7, %8 : vector<16x1xi1>, vector<16x1xf32>
    %c0_5 = arith.constant 0 : index
    %c0_6 = arith.constant 0 : index
    %10 = vector.load %arg2[%c0_5, %c0_6] : memref<16x128xf32, #tpu.memory_space<vmem>>, vector<16x128xf32>
    %11 = arith.truncf %10 : vector<16x128xf32> to vector<16x128xbf16>
    %c0_7 = arith.constant 0 : index
    %c0_8 = arith.constant 0 : index
    %12 = vector.load %arg5[%c0_7, %c0_8] : memref<128x128xf32, #tpu.memory_space<vmem>>, vector<128x128xf32>
    %13 = arith.truncf %12 : vector<128x128xf32> to vector<128x128xbf16>
    %cst_9 = arith.constant dense<0.000000e+00> : vector<16x128xf32>
    %14 = tpu.matmul %11, %13, %cst_9 {dimension_numbers = #tpu.dot_dimension_numbers<[1], [0], [0], [1], [0, 0, 1, 1], [], []>} : vector<16x128xbf16>, vector<128x128xbf16>, vector<16x128xf32> -> vector<16x128xf32>
    %15 = vector.broadcast %9 : vector<16x1xf32> to vector<16x128xf32>
    %16 = arith.mulf %14, %15 : vector<16x128xf32>
    %17 = arith.truncf %0 : vector<16x16xf32> to vector<16x16xbf16>
    %18 = arith.truncf %16 : vector<16x128xf32> to vector<16x128xbf16>
    %cst_10 = arith.constant dense<0.000000e+00> : vector<16x128xf32>
    %19 = tpu.matmul %17, %18, %cst_10 {dimension_numbers = #tpu.dot_dimension_numbers<[1], [0], [0], [1], [0, 0, 1, 1], [], []>} : vector<16x16xbf16>, vector<16x128xbf16>, vector<16x128xf32> -> vector<16x128xf32>
    %20 = vector.broadcast %1 : vector<16x1xf32> to vector<16x128xf32>
    %21 = arith.mulf %20, %16 : vector<16x128xf32>
    %22 = arith.addf %19, %21 : vector<16x128xf32>
    %23 = vector.broadcast %9 : vector<16x1xf32> to vector<16x128xf32>
    %24 = arith.mulf %23, %22 : vector<16x128xf32>
    %c0_11 = arith.constant 0 : index
    %c0_12 = arith.constant 0 : index
    %25 = vector.load %arg6[%c0_11, %c0_12] : memref<1x128xf32, #tpu.memory_space<vmem>>, vector<1x128xf32>
    %26 = vector.broadcast %25 : vector<1x128xf32> to vector<16x128xf32>
    %27 = arith.addf %24, %26 : vector<16x128xf32>
    %cst_13 = arith.constant 0.000000e+00 : f32
    %28 = vector.broadcast %cst_13 : f32 to vector<16x128xf32>
    %29 = arith.maximumf %27, %28 : vector<16x128xf32>
    %c0_14 = arith.constant 0 : index
    %c0_15 = arith.constant 0 : index
    %30 = vector.load %arg3[%c0_14, %c0_15] : memref<3x16xf32, #tpu.memory_space<vmem>>, vector<3x16xf32>
    %c0_16 = arith.constant 0 : index
    %c0_17 = arith.constant 0 : index
    %31 = vector.load %arg4[%c0_16, %c0_17] : memref<16x3xf32, #tpu.memory_space<vmem>>, vector<16x3xf32>
    %cst_18 = arith.constant dense<0.000000e+00> : vector<3xf32>
    %32 = vector.multi_reduction <add>, %30, %cst_18 [1] : vector<3x16xf32> to vector<3xf32>
    %33 = vector.shape_cast %32 : vector<3xf32> to vector<3x1xf32>
    %cst_19 = arith.constant 1.000000e+00 : f32
    %34 = vector.broadcast %cst_19 : f32 to vector<3x1xf32>
    %35 = arith.maximumf %33, %34 : vector<3x1xf32>
    %cst_20 = arith.constant 1.000000e+00 : f32
    %36 = vector.broadcast %cst_20 : f32 to vector<3x1xf32>
    %37 = arith.divf %36, %35 : vector<3x1xf32>
    %c0_21 = arith.constant 0 : index
    %c0_22 = arith.constant 0 : index
    %38 = vector.load %arg7[%c0_21, %c0_22] : memref<3x128xf32, #tpu.memory_space<vmem>>, vector<3x128xf32>
    %39 = vector.extract_strided_slice %38 {offsets = [0, 0], sizes = [1, 128], strides = [1, 1]} : vector<3x128xf32> to vector<1x128xf32>
    %40 = vector.extract_strided_slice %38 {offsets = [1, 0], sizes = [1, 128], strides = [1, 1]} : vector<3x128xf32> to vector<1x128xf32>
    %41 = vector.extract_strided_slice %38 {offsets = [2, 0], sizes = [1, 128], strides = [1, 1]} : vector<3x128xf32> to vector<1x128xf32>
    %42 = arith.mulf %29, %29 : vector<16x128xf32>
    %43 = tpu.concatenate %29, %42 in 1 : vector<16x128xf32>, vector<16x128xf32> -> vector<16x256xf32>
    %cst_23 = arith.constant dense<0.000000e+00> : vector<3x256xf32>
    %44 = tpu.matmul %30, %43, %cst_23 {dimension_numbers = #tpu.dot_dimension_numbers<[1], [0], [0], [1], [0, 0, 1, 1], [], []>} : vector<3x16xf32>, vector<16x256xf32>, vector<3x256xf32> -> vector<3x256xf32>
    %45 = vector.broadcast %37 : vector<3x1xf32> to vector<3x256xf32>
    %46 = arith.mulf %44, %45 : vector<3x256xf32>
    %47 = vector.extract_strided_slice %46 {offsets = [0, 0], sizes = [3, 128], strides = [1, 1]} : vector<3x256xf32> to vector<3x128xf32>
    %48 = vector.extract_strided_slice %46 {offsets = [0, 128], sizes = [3, 128], strides = [1, 1]} : vector<3x256xf32> to vector<3x128xf32>
    %cst_24 = arith.constant 2.000000e+00 : f32
    %49 = vector.broadcast %cst_24 : f32 to vector<1x128xf32>
    %50 = arith.subf %49, %41 : vector<1x128xf32>
    %51 = arith.mulf %41, %50 : vector<1x128xf32>
    %52 = vector.broadcast %51 : vector<1x128xf32> to vector<3x128xf32>
    %53 = arith.mulf %52, %47 : vector<3x128xf32>
    %54 = arith.mulf %53, %47 : vector<3x128xf32>
    %55 = arith.subf %48, %54 : vector<3x128xf32>
    %cst_25 = arith.constant 0.000000e+00 : f32
    %56 = vector.broadcast %cst_25 : f32 to vector<3x128xf32>
    %57 = arith.maximumf %55, %56 : vector<3x128xf32>
    %cst_26 = arith.constant 9.99999974E-6 : f32
    %58 = vector.broadcast %cst_26 : f32 to vector<3x128xf32>
    %59 = arith.addf %57, %58 : vector<3x128xf32>
    %60 = math.rsqrt %59 : vector<3x128xf32>
    %61 = tpu.concatenate %47, %60 in 1 : vector<3x128xf32>, vector<3x128xf32> -> vector<3x256xf32>
    %cst_27 = arith.constant dense<0.000000e+00> : vector<16x256xf32>
    %62 = tpu.matmul %31, %61, %cst_27 {dimension_numbers = #tpu.dot_dimension_numbers<[1], [0], [0], [1], [0, 0, 1, 1], [], []>} : vector<16x3xf32>, vector<3x256xf32>, vector<16x256xf32> -> vector<16x256xf32>
    %63 = vector.extract_strided_slice %62 {offsets = [0, 0], sizes = [16, 128], strides = [1, 1]} : vector<16x256xf32> to vector<16x128xf32>
    %64 = vector.extract_strided_slice %62 {offsets = [0, 128], sizes = [16, 128], strides = [1, 1]} : vector<16x256xf32> to vector<16x128xf32>
    %65 = vector.broadcast %41 : vector<1x128xf32> to vector<16x128xf32>
    %66 = arith.mulf %65, %63 : vector<16x128xf32>
    %67 = arith.subf %29, %66 : vector<16x128xf32>
    %68 = vector.broadcast %39 : vector<1x128xf32> to vector<16x128xf32>
    %69 = arith.mulf %68, %67 : vector<16x128xf32>
    %70 = arith.mulf %69, %64 : vector<16x128xf32>
    %71 = vector.broadcast %40 : vector<1x128xf32> to vector<16x128xf32>
    %72 = arith.addf %70, %71 : vector<16x128xf32>
    %c0_28 = arith.constant 0 : index
    %c0_29 = arith.constant 0 : index
    %73 = vector.load %arg9[%c0_28, %c0_29] : memref<16x128xf32, #tpu.memory_space<vmem>>, vector<16x128xf32>
    tpu.vector_store %arg9[%c0_28, %c0_29], %72 {strides = array<i32>} : memref<16x128xf32, #tpu.memory_space<vmem>>, vector<16x128xf32>,
    %c0_30 = arith.constant 0 : index
    %c0_31 = arith.constant 0 : index
    %74 = vector.load %arg8[%c0_30, %c0_31] : memref<128x1xf32, #tpu.memory_space<vmem>>, vector<128x1xf32>
    %cst_32 = arith.constant dense<0.000000e+00> : vector<16x1xf32>
    %75 = tpu.matmul %72, %74, %cst_32 {dimension_numbers = #tpu.dot_dimension_numbers<[1], [0], [0], [1], [0, 0, 1, 1], [], []>} : vector<16x128xf32>, vector<128x1xf32>, vector<16x1xf32> -> vector<16x1xf32>
    %cst_33 = arith.constant 5.000000e-01 : f32
    %76 = vector.broadcast %cst_33 : f32 to vector<16x16xf32>
    %77 = arith.cmpf ogt, %0, %76 : vector<16x16xf32>
    %cst_34 = arith.constant -1.000000e+30 : f32
    %78 = vector.shape_cast %75 : vector<16x1xf32> to vector<16x1xf32>
    %79 = vector.broadcast %78 : vector<16x1xf32> to vector<16x16xf32>
    %80 = vector.broadcast %cst_34 : f32 to vector<16x16xf32>
    %81 = arith.select %77, %79, %80 : vector<16x16xi1>, vector<16x16xf32>
    %cst_35 = arith.constant dense<0xFF800000> : vector<16xf32>
    %82 = vector.multi_reduction <maximumf>, %81, %cst_35 [0] : vector<16x16xf32> to vector<16xf32>
    %83 = vector.shape_cast %82 : vector<16xf32> to vector<1x16xf32>
    %84 = vector.broadcast %83 : vector<1x16xf32> to vector<16x16xf32>
    %85 = arith.subf %81, %84 : vector<16x16xf32>
    %86 = math.exp %85 : vector<16x16xf32>
    %cst_36 = arith.constant 0.000000e+00 : f32
    %87 = vector.broadcast %cst_36 : f32 to vector<16x16xf32>
    %88 = arith.select %77, %86, %87 : vector<16x16xi1>, vector<16x16xf32>
    %cst_37 = arith.constant dense<0.000000e+00> : vector<16xf32>
    %89 = vector.multi_reduction <add>, %88, %cst_37 [0] : vector<16x16xf32> to vector<16xf32>
    %90 = vector.shape_cast %89 : vector<16xf32> to vector<1x16xf32>
    %cst_38 = arith.constant 1.000000e-16 : f32
    %91 = vector.broadcast %cst_38 : f32 to vector<1x16xf32>
    %92 = arith.addf %90, %91 : vector<1x16xf32>
    %cst_39 = arith.constant 1.000000e+00 : f32
    %93 = vector.broadcast %cst_39 : f32 to vector<1x16xf32>
    %94 = arith.divf %93, %92 : vector<1x16xf32>
    %95 = vector.broadcast %94 : vector<1x16xf32> to vector<16x16xf32>
    %96 = arith.mulf %88, %95 : vector<16x16xf32>
    %cst_40 = arith.constant 5.000000e-01 : f32
    %97 = vector.broadcast %cst_40 : f32 to vector<16x16xf32>
    %98 = arith.addf %96, %97 : vector<16x16xf32>
    %cst_41 = arith.constant 0.000000e+00 : f32
    %99 = vector.broadcast %cst_41 : f32 to vector<16x16xf32>
    %100 = arith.select %77, %98, %99 : vector<16x16xi1>, vector<16x16xf32>
    %c0_42 = arith.constant 0 : index
    %c0_43 = arith.constant 0 : index
    %101 = vector.load %arg10[%c0_42, %c0_43] : memref<16x16xf32, #tpu.memory_space<vmem>>, vector<16x16xf32>
    tpu.vector_store %arg10[%c0_42, %c0_43], %100 {strides = array<i32>} : memref<16x16xf32, #tpu.memory_space<vmem>>, vector<16x16xf32>,
    return
  }
}

module attributes {stable_mosaic.version = 11 : i64} {
  func.func @_head_kernel(%arg0: memref<16x128xf32, #tpu.memory_space<vmem>>, %arg1: memref<2x16xf32, #tpu.memory_space<vmem>>, %arg2: memref<16x2xf32, #tpu.memory_space<vmem>>, %arg3: memref<128x128xf32, #tpu.memory_space<vmem>>, %arg4: memref<1x128xf32, #tpu.memory_space<vmem>>, %arg5: memref<128x4xf32, #tpu.memory_space<vmem>>, %arg6: memref<1x4xf32, #tpu.memory_space<vmem>>, %arg7: memref<2x4xf32, #tpu.memory_space<vmem>>, %arg8: memref<2x4xf32, #tpu.memory_space<vmem>>) attributes {dimension_semantics = [], scalar_prefetch = 0 : i64, scratch_operands = 0 : i64, tpu.core_type = #tpu.core_type<tc>} {
    %c0 = arith.constant 0 : index
    %c0_0 = arith.constant 0 : index
    %0 = vector.load %arg0[%c0, %c0_0] : memref<16x128xf32, #tpu.memory_space<vmem>>, vector<16x128xf32>
    %c0_1 = arith.constant 0 : index
    %c0_2 = arith.constant 0 : index
    %1 = vector.load %arg1[%c0_1, %c0_2] : memref<2x16xf32, #tpu.memory_space<vmem>>, vector<2x16xf32>
    %c0_3 = arith.constant 0 : index
    %c0_4 = arith.constant 0 : index
    %2 = vector.load %arg2[%c0_3, %c0_4] : memref<16x2xf32, #tpu.memory_space<vmem>>, vector<16x2xf32>
    %cst = arith.constant dense<0.000000e+00> : vector<2xf32>
    %3 = vector.multi_reduction <add>, %1, %cst [1] : vector<2x16xf32> to vector<2xf32>
    %4 = vector.shape_cast %3 : vector<2xf32> to vector<2x1xf32>
    %cst_5 = arith.constant 1.000000e+00 : f32
    %5 = vector.broadcast %cst_5 : f32 to vector<2x1xf32>
    %6 = arith.maximumf %4, %5 : vector<2x1xf32>
    %cst_6 = arith.constant 1.000000e+00 : f32
    %7 = vector.broadcast %cst_6 : f32 to vector<2x1xf32>
    %8 = arith.divf %7, %6 : vector<2x1xf32>
    %cst_7 = arith.constant dense<0.000000e+00> : vector<2x128xf32>
    %9 = tpu.matmul %1, %0, %cst_7 {dimension_numbers = #tpu.dot_dimension_numbers<[1], [0], [0], [1], [0, 0, 1, 1], [], []>} : vector<2x16xf32>, vector<16x128xf32>, vector<2x128xf32> -> vector<2x128xf32>
    %10 = vector.broadcast %8 : vector<2x1xf32> to vector<2x128xf32>
    %11 = arith.mulf %9, %10 : vector<2x128xf32>
    %12 = vector.extract_strided_slice %2 {offsets = [0, 0], sizes = [16, 1], strides = [1, 1]} : vector<16x2xf32> to vector<16x1xf32>
    %cst_8 = arith.constant 5.000000e-01 : f32
    %13 = vector.broadcast %cst_8 : f32 to vector<16x1xf32>
    %14 = arith.cmpf ogt, %12, %13 : vector<16x1xf32>
    %cst_9 = arith.constant -1.000000e+30 : f32
    %15 = vector.shape_cast %14 : vector<16x1xi1> to vector<16x1xi1>
    %16 = vector.broadcast %15 : vector<16x1xi1> to vector<16x128xi1>
    %17 = vector.broadcast %cst_9 : f32 to vector<16x128xf32>
    %18 = arith.select %16, %0, %17 : vector<16x128xi1>, vector<16x128xf32>
    %cst_10 = arith.constant dense<0xFF800000> : vector<128xf32>
    %19 = vector.multi_reduction <maximumf>, %18, %cst_10 [0] : vector<16x128xf32> to vector<128xf32>
    %20 = vector.shape_cast %19 : vector<128xf32> to vector<1x128xf32>
    %21 = vector.extract_strided_slice %2 {offsets = [0, 1], sizes = [16, 1], strides = [1, 1]} : vector<16x2xf32> to vector<16x1xf32>
    %cst_11 = arith.constant 5.000000e-01 : f32
    %22 = vector.broadcast %cst_11 : f32 to vector<16x1xf32>
    %23 = arith.cmpf ogt, %21, %22 : vector<16x1xf32>
    %cst_12 = arith.constant -1.000000e+30 : f32
    %24 = vector.shape_cast %23 : vector<16x1xi1> to vector<16x1xi1>
    %25 = vector.broadcast %24 : vector<16x1xi1> to vector<16x128xi1>
    %26 = vector.broadcast %cst_12 : f32 to vector<16x128xf32>
    %27 = arith.select %25, %0, %26 : vector<16x128xi1>, vector<16x128xf32>
    %cst_13 = arith.constant dense<0xFF800000> : vector<128xf32>
    %28 = vector.multi_reduction <maximumf>, %27, %cst_13 [0] : vector<16x128xf32> to vector<128xf32>
    %29 = vector.shape_cast %28 : vector<128xf32> to vector<1x128xf32>
    %30 = tpu.concatenate %20, %29 in 0 : vector<1x128xf32>, vector<1x128xf32> -> vector<2x128xf32>
    %cst_14 = arith.constant 0.000000e+00 : f32
    %31 = vector.broadcast %cst_14 : f32 to vector<2x1xf32>
    %32 = arith.cmpf ogt, %4, %31 : vector<2x1xf32>
    %cst_15 = arith.constant 0.000000e+00 : f32
    %33 = vector.shape_cast %32 : vector<2x1xi1> to vector<2x1xi1>
    %34 = vector.broadcast %33 : vector<2x1xi1> to vector<2x128xi1>
    %35 = vector.broadcast %cst_15 : f32 to vector<2x128xf32>
    %36 = arith.select %34, %30, %35 : vector<2x128xi1>, vector<2x128xf32>
    %37 = arith.addf %11, %36 : vector<2x128xf32>
    %38 = arith.truncf %37 : vector<2x128xf32> to vector<2x128xbf16>
    %c0_16 = arith.constant 0 : index
    %c0_17 = arith.constant 0 : index
    %39 = vector.load %arg3[%c0_16, %c0_17] : memref<128x128xf32, #tpu.memory_space<vmem>>, vector<128x128xf32>
    %40 = arith.truncf %39 : vector<128x128xf32> to vector<128x128xbf16>
    %cst_18 = arith.constant dense<0.000000e+00> : vector<2x128xf32>
    %41 = tpu.matmul %38, %40, %cst_18 {dimension_numbers = #tpu.dot_dimension_numbers<[1], [0], [0], [1], [0, 0, 1, 1], [], []>} : vector<2x128xbf16>, vector<128x128xbf16>, vector<2x128xf32> -> vector<2x128xf32>
    %c0_19 = arith.constant 0 : index
    %c0_20 = arith.constant 0 : index
    %42 = vector.load %arg4[%c0_19, %c0_20] : memref<1x128xf32, #tpu.memory_space<vmem>>, vector<1x128xf32>
    %43 = vector.broadcast %42 : vector<1x128xf32> to vector<2x128xf32>
    %44 = arith.addf %41, %43 : vector<2x128xf32>
    %45 = arith.truncf %44 : vector<2x128xf32> to vector<2x128xbf16>
    %c0_21 = arith.constant 0 : index
    %c0_22 = arith.constant 0 : index
    %46 = vector.load %arg5[%c0_21, %c0_22] : memref<128x4xf32, #tpu.memory_space<vmem>>, vector<128x4xf32>
    %47 = arith.truncf %46 : vector<128x4xf32> to vector<128x4xbf16>
    %cst_23 = arith.constant dense<0.000000e+00> : vector<2x4xf32>
    %48 = tpu.matmul %45, %47, %cst_23 {dimension_numbers = #tpu.dot_dimension_numbers<[1], [0], [0], [1], [0, 0, 1, 1], [], []>} : vector<2x128xbf16>, vector<128x4xbf16>, vector<2x4xf32> -> vector<2x4xf32>
    %c0_24 = arith.constant 0 : index
    %c0_25 = arith.constant 0 : index
    %49 = vector.load %arg6[%c0_24, %c0_25] : memref<1x4xf32, #tpu.memory_space<vmem>>, vector<1x4xf32>
    %50 = vector.broadcast %49 : vector<1x4xf32> to vector<2x4xf32>
    %51 = arith.addf %48, %50 : vector<2x4xf32>
    %cst_26 = arith.constant dense<0xFF800000> : vector<2xf32>
    %52 = vector.multi_reduction <maximumf>, %51, %cst_26 [1] : vector<2x4xf32> to vector<2xf32>
    %53 = vector.shape_cast %52 : vector<2xf32> to vector<2x1xf32>
    %54 = vector.broadcast %53 : vector<2x1xf32> to vector<2x4xf32>
    %55 = arith.subf %51, %54 : vector<2x4xf32>
    %56 = math.exp %55 : vector<2x4xf32>
    %cst_27 = arith.constant dense<0.000000e+00> : vector<2xf32>
    %57 = vector.multi_reduction <add>, %56, %cst_27 [1] : vector<2x4xf32> to vector<2xf32>
    %58 = vector.shape_cast %57 : vector<2xf32> to vector<2x1xf32>
    %59 = vector.broadcast %58 : vector<2x1xf32> to vector<2x4xf32>
    %60 = arith.divf %56, %59 : vector<2x4xf32>
    %c0_28 = arith.constant 0 : index
    %c0_29 = arith.constant 0 : index
    %61 = vector.load %arg7[%c0_28, %c0_29] : memref<2x4xf32, #tpu.memory_space<vmem>>, vector<2x4xf32>
    tpu.vector_store %arg7[%c0_28, %c0_29], %51 {strides = array<i32>} : memref<2x4xf32, #tpu.memory_space<vmem>>, vector<2x4xf32>,
    %c0_30 = arith.constant 0 : index
    %c0_31 = arith.constant 0 : index
    %62 = vector.load %arg8[%c0_30, %c0_31] : memref<2x4xf32, #tpu.memory_space<vmem>>, vector<2x4xf32>
    tpu.vector_store %arg8[%c0_30, %c0_31], %60 {strides = array<i32>} : memref<2x4xf32, #tpu.memory_space<vmem>>, vector<2x4xf32>,
    return
  }
}

</mosaic_0001>

<bundles_post_ra>
// kernel: forward.4
= control target key start
LH: loop header
LB: loop body
LE: loop exit
PB: predicated region body
PF: predicated region fallthrough
CT: control target
= control target key end

     0   :  { %vm39_vm0 = vcmask 130048   ;;  %v689_v2 = vmov 0.0   ;;  %vm63_vm1 = vcmask 1043456   ;;  %vm690_vm2 = vmmov 0   ;;  %s894_s0 = inlined_call_operand.vmem [shape: f32[16,16], index: 0, kind: input, shape index: {}]   ;;  %s895_s5 = inlined_call_operand.vmem [shape: f32[8,128], index: 5, kind: input, shape index: {}]   ;;  %s896_s2 = inlined_call_operand.vmem [shape: f32[16,8], index: 2, kind: input, shape index: {}]   ;;  %s897_s1 = inlined_call_operand.vmem [shape: f32[16,1], index: 1, kind: input, shape index: {}]   ;;  %s898_s3 = inlined_call_operand.vmem [shape: f32[3,16], index: 3, kind: input, shape index: {}]   ;;  %s899_s6 = inlined_call_operand.vmem [shape: f32[1,128], index: 6, kind: input, shape index: {}]   ;;  %s900_s8 = inlined_call_operand.vmem [shape: f32[128,1], index: 8, kind: input, shape index: {}]   ;;  %s901_s7 = inlined_call_operand.vmem [shape: f32[3,128], index: 7, kind: input, shape index: {}]   ;;  %s902_s4 = inlined_call_operand.vmem [shape: f32[16,3], index: 4, kind: input, shape index: {}]   ;;  %s903_s9 = inlined_call_operand.vmem [shape: f32[16,128], index: 9, kind: output, shape index: {0}]   ;;  %s904_s10 = inlined_call_operand.vmem [shape: f32[16,16], index: 10, kind: output, shape index: {1}]  }
   0x1   :  { %v750_v0 = vld [vmem:[%s894_s0] sm:$0xff]  ;;  %v755_v1 = vld [vmem:[%s894_s0 + $0x8] sm:$0xff]  ;;  %587 = vmatprep.subr.bf16.mxu1 %v689_v2  ;;  %589 = vmatprep.mubr.msk.bf16.mxu1 %vm690_vm2, %v689_v2  ;;  %vm59_vm3 = vcmask 64512   ;;  %v691_v11 = vmov 0   ;;  %vm194_vm6 = vcmask 124928   ;;  %v409_v57 = vld [vmem:[%s900_s8 + $0x10] sm:$0xff] }
   0x2   :  { %v57_v3 = vld [vmem:[%s895_s5] sm:$0xff]  ;;  %v40_v4 = vsel %vm39_vm0, %v750_v0, 0.0  ;;  %v55_v7 = vld [vmem:[%s896_s2 + $0x8] sm:$0xff]  ;;  %v43_v8 = vsel %vm39_vm0, %v755_v1, 0.0  ;;  %673 = vset.pattern.permute.xlu1 %v691_v11  ;;  %674 = vset.pattern.permute.xlu0 %v691_v11  ;;  %v120_v31 = vpack.c.bf16 %v755_v1, %v750_v0  ;;  %v410_v59 = vld [vmem:[%s900_s8 + $0x18] sm:$0xff]  ;;  %v282_v11 = vlaneseq }
   0x3   :  { %v58_v5 = vpack.c.bf16 %v57_v3, %v57_v3  ;;  %v54_v6 = vld [vmem:[%s896_s2] sm:$0xff]  ;;  %41 = vadd.xlane.f32.xlu0 %v40_v4  ;;  %v38_v15 = vld [vmem:[%s897_s1 + $0x8] sm:$0xff]  ;;  %v642_v60 = vpack.c.bf16 %v410_v59, %v409_v57  ;;  %v413_v3 = vld [vmem:[%s900_s8 + $0x30] sm:$0xff]  ;;  %vm299_vm7 = vcmask 1042432   ;;  %vm292_vm8 = vcmask 23552  }
   0x4   :  { %v56_v10 = vpack.c.bf16 %v55_v7, %v54_v6  ;;  %v37_v12 = vld [vmem:[%s897_s1] sm:$0xff]  ;;  %v408_v56 = vld [vmem:[%s900_s8 + $0x8] sm:$0xff]  ;;  %v414_v4 = vld [vmem:[%s900_s8 + $0x38] sm:$0xff]  ;;  %vm499_vm9 = vcmp.gt.f32.partialorder %v755_v1, 0.5  ;;  %vm498_vm10 = vcmp.gt.f32.partialorder %v750_v0, 0.5 }
   0x5   :  { %v65_v9 = vsel %vm63_vm1, %v58_v5, 0  ;;  %v191_v32 = vld [vmem:[%s898_s3] sm:$0x7]  ;;  %v412_v62 = vld [vmem:[%s900_s8 + $0x28] sm:$0xff]  ;;  %v650_v5 = vpack.c.bf16 %v414_v4, %v413_v3 }
   0x6   :  { %588 = vmatpush3.bf16.msra.mxu1 %v65_v9  ;;  %v195_v33 = vsel %vm194_vm6, %v191_v32, 0.0  ;;  %v559_v41 = vld [vmem:[%s899_s6] ss:$0 sm:$0xff]  ;;  %v416_v7 = vld [vmem:[%s900_s8 + $0x48] sm:$0xff] }
   0x7   :  { %593 = vmatprep.subr.bf16.mxu1 %v689_v2  ;;  %44 = vadd.xlane.f32.xlu0 %v43_v8  ;;  %v407_v55 = vld [vmem:[%s900_s8] sm:$0xff] }
   0x8   :  { %v638_v58 = vpack.c.bf16 %v408_v56, %v407_v55  ;;  %v411_v61 = vld [vmem:[%s900_s8 + $0x20] sm:$0xff] }
   0x9   :  { %590 = vmatmul.mubr.msk.bf16.vlgmr.msra.gmra.mrb[0].mxu1 %vm59_vm3, %v56_v10  ;;  %v646_v63 = vpack.c.bf16 %v412_v62, %v411_v61  ;;  %v415_v6 = vld [vmem:[%s900_s8 + $0x40] sm:$0xff] }
   0xa   :  { %595 = vmatprep.mubr.msk.bf16.mxu1 %vm690_vm2, %v689_v2  ;;  %639 = vmatprep.subr.bf16.mxu0 %v638_v58  ;;  %v654_v8 = vpack.c.bf16 %v416_v7, %v415_v6 }
   0xb   :  { %641 = vmatpush3.bf16.msra.mxu0 %v638_v58 }
   0xc   :  { %643 = vmatprep.subr.bf16.mxu0 %v642_v60 }
   0xf   :  { %645 = vmatpush3.bf16.msra.mxu0 %v642_v60 }
  0x10   :  { %647 = vmatprep.subr.bf16.mxu0 %v646_v63 }
  0x13   :  { %649 = vmatpush3.bf16.msra.mxu0 %v646_v63 }
  0x14   :  { %651 = vmatprep.subr.bf16.mxu0 %v650_v5 }
  0x17   :  { %653 = vmatpush3.bf16.msra.mxu0 %v650_v5 }
  0x18   :  { %655 = vmatprep.subr.bf16.mxu0 %v654_v8 }
  0x1b   :  { %657 = vmatpush3.bf16.msra.mxu0 %v654_v8 }
  0x1d   :  { %124 = vperm.xlu0 %674, %v37_v12  }
  0x90   :  { %v42_v13 = vpop.xlane.xlu0 %41 }
  0x91   :  { %v46_v14 = vadd.f32 %v42_v13, %v37_v12  ;;  %v201_v12 = vld [vmem:[%s901_s7] sm:$0x7] }
  0x92   :  { %v280_v13 = vsub.f32 2.0, %v201_v12 }
  0x93   :  { %675 = vrsqrt.f32 %v46_v14  ;;  %vm48_vm4 = vcmp.gt.f32.partialorder %v46_v14, 0.0  ;;  %v283_v14 = vshrl.u32 %v282_v11, 7 }
  0x94   :  { %v45_v16 = vpop.xlane.xlu0 %44 }
  0x95   :  { %v47_v17 = vadd.f32 %v45_v16, %v38_v15  ;;  %v284_v16 = vsub.s32 2, %v283_v14 }
  0x97   :  { %677 = vrsqrt.f32 %v47_v17  ;;  %vm49_vm5 = vcmp.gt.f32.partialorder %v47_v17, 0.0 }
  0x9c   :  { %v125_v34 = vpop.permute.xlu0 %124 }
  0x9d   :  { %v676_v18 = vpop.eup %675 }
  0x9e   :  { %v52_v19 = vsel %vm48_vm4, %v676_v18, 0.0 }
  0x9f   :  { %110 = vperm.xlu1 %673, %v52_v19  }
  0xa1   :  { %v678_v20 = vpop.eup %677 }
  0xa2   :  { %v53_v21 = vsel %vm49_vm5, %v678_v20, 0.0 }
  0xa3   :  { %115 = vperm.xlu1 %673, %v53_v21  }
  0xa7   :  { %129 = vperm.xlu1 %673, %v38_v15   ;;  %v281_v15 = vmul.f32 %v280_v13, %v201_v12 }
  0xa9   :  { %v285_v18 = vrot.slane %v281_v15, %v284_v16 }
  0xcb   :  { %196 = vadd.xlane.f32.xlu1 %v195_v33 }
  0xdc   :  { %v101_v22 = vpop.f32.mrb[0].mxu1 }
  0xdd   :  { %v591_v23 = vpop.f32.mrb[1].mxu1 }
  0xde   :  { %v104_v24 = vpop.f32.mrb[2].mxu1 }
  0xdf   :  { %v592_v25 = vpop.f32.mrb[3].mxu1 }
 0x11e   :  { %v111_v26 = vpop.permute.xlu1 %110 }
 0x11f   :  { %v118_v28 = vmul.f32 %v111_v26, %v101_v22 }
 0x121   :  { %v132_v36 = vmul.f32 %v125_v34, %v118_v28  ;;  %v420_v34 = vld [vmem:[%s900_s8 + $0x68] sm:$0xff] }
 0x122   :  { %v116_v27 = vpop.permute.xlu1 %115 }
 0x123   :  { %v119_v29 = vmul.f32 %v116_v27, %v104_v24 }
 0x125   :  { %v121_v30 = vpack.c.bf16 %v119_v29, %v118_v28 }
 0x126   :  { %v130_v35 = vpop.permute.xlu1 %129 }
 0x127   :  { %594 = vmatpush3.bf16.msra.mxu1 %v121_v30  ;;  %v133_v38 = vmul.f32 %v130_v35, %v119_v29  ;;  %v192_v29 = vld [vmem:[%s902_s4] sm:$0xff]  ;;  %v193_v30 = vld [vmem:[%s902_s4 + $0x8] sm:$0xff] }
 0x12a   :  { %596 = vmatmul.mubr.msk.bf16.vlgmr.msra.gmra.mrb[4].mxu1 %vm39_vm0, %v120_v31  ;;  %v417_v31 = vld [vmem:[%s900_s8 + $0x50] sm:$0xff] }
 0x12b   :  { %271 = vmatprep.mubr.f32.mxu1 %v689_v2 }
 0x158   :  { %v197_v9 = vpop.xlane.xlu1 %196 }
 0x159   :  { %v198_v10 = vmax.f32 %v197_v9, 1.0 }
 0x15b   :  { %679 = vrcp.f32 %v198_v10 }
 0x165   :  { %v680_v17 = vpop.eup %679 }
 0x1fd   :  { %v171_v37 = vpop.f32.mrb[4].mxu1 }
 0x1fe   :  { %v172_v39 = vadd.f32 %v171_v37, %v132_v36  ;;  %v597_v40 = vpop.f32.mrb[5].mxu1  ;;  %v421_v36 = vld [vmem:[%s900_s8 + $0x70] sm:$0xff]  ;;  %v422_v37 = vld [vmem:[%s900_s8 + $0x78] sm:$0xff] }
 0x1ff   :  { %v174_v42 = vpop.f32.mrb[6].mxu1  ;;  %v393_v40 = vsub.s32 0, %v283_v14 }
 0x200   :  { %v178_v43 = vmul.f32 %v172_v39, %v111_v26  ;;  %v175_v44 = vadd.f32 %v174_v42, %v133_v38  ;;  %v598_v45 = vpop.f32.mrb[7].mxu1  ;;  %v666_v38 = vpack.c.bf16 %v422_v37, %v421_v36  ;;  %v386_v39 = vrot.slane %v201_v12, %v284_v16 }
 0x201   :  { %v401_v45 = vsub.s32 1, %v283_v14 }
 0x202   :  { %v187_v46 = vadd.f32 %v559_v41, %v178_v43  ;;  %v179_v47 = vmul.f32 %v175_v44, %v116_v27  ;;  %v394_v44 = vrot.slane %v201_v12, %v393_v40 }
 0x204   :  { %v790_v48 = vmax.f32 %v187_v46, 0.0  ;;  %v188_v49 = vadd.f32 %v559_v41, %v179_v47 }
 0x206   :  { %v792_v50 = vmax.f32 %v188_v49, 0.0  ;;  %v202_v51 = vmul.f32 %v790_v48, %v790_v48 }
 0x208   :  { %v203_v52 = vmul.f32 %v792_v50, %v792_v50  ;;  %v636_v54 = vpack.c.bf16 %v792_v50, %v790_v48 }
 0x20a   :  { %v634_v53 = vpack.c.bf16 %v203_v52, %v202_v51 }
 0x20c   :  { %635 = vmatprep.subr.bf16.mxu1 %v634_v53  ;;  %v402_v53 = vrot.slane %v201_v12, %v401_v45 }
 0x20d   :  { %637 = vmatpush1.bf16.msra.mxu1 %v636_v54 }
 0x210   :  { %560 = vmatmul.mubr.msk.f32.vlgmr.msra.gmra.mrb[8].mxu1 %vm39_vm0, %v191_v32  ;;  %v418_v32 = vld [vmem:[%s900_s8 + $0x58] sm:$0xff] }
 0x211   :  { %370 = vmatprep.mubr.f32.mxu1 %v689_v2  ;;  %v658_v33 = vpack.c.bf16 %v418_v32, %v417_v31 }
 0x213   :  { %659 = vmatprep.subr.bf16.mxu0 %v658_v33 }
 0x214   :  { %661 = vmatpush3.bf16.msra.mxu0 %v658_v33 }
 0x2e3   :  { %v273_v19 = vpop.f32.mrb[8].mxu1 }
 0x2e4   :  { %v278_v20 = vmul.f32 %v680_v17, %v273_v19  ;;  %v275_v21 = vpop.f32.mrb[9].mxu1 }
 0x2e5   :  { %v279_v23 = vmul.f32 %v680_v17, %v275_v21 }
 0x2e6   :  { %v286_v22 = vmul.f32 %v285_v18, %v278_v20 }
 0x2e8   :  { %v287_v24 = vmul.f32 %v286_v22, %v278_v20 }
 0x2ea   :  { %v288_v25 = vsub.f32 %v279_v23, %v287_v24 }
 0x2ec   :  { %v289_v26 = vmax.f32 %v288_v25, 0.0 }
 0x2ee   :  { %v290_v27 = vadd.f32 1e-05, %v289_v26 }
 0x2f0   :  { %681 = vrsqrt.f32 %v290_v27 }
 0x2fa   :  { %v682_v28 = vpop.eup %681 }
 0x2fb   :  { %561 = vmatprep.subr.msk.mxu1 %vm299_vm7, %v682_v28 }
 0x2fc   :  { %562 = vmatpush1.msk.msra.mxu1 %vm299_vm7, %v278_v20 }
 0x2fd   :  { %563 = vmatmul.mubr.msk.f32.vlgmr.msra.gmra.mrb[10].mxu1 %vm292_vm8, %v192_v29 }
 0x2fe   :  { %376 = vmatprep.mubr.f32.mxu1 %v689_v2  ;;  %v419_v2 = vld [vmem:[%s900_s8 + $0x60] sm:$0xff] }
 0x2ff   :  { %v662_v35 = vpack.c.bf16 %v420_v34, %v419_v2 }
 0x301   :  { %564 = vmatmul.mubr.msk.f32.gmra.mrb[12].mxu1 %vm292_vm8, %v193_v30  ;;  %663 = vmatprep.subr.bf16.mxu0 %v662_v35 }
 0x302   :  { %665 = vmatpush3.bf16.msra.mxu0 %v662_v35 }
 0x303   :  { %667 = vmatprep.subr.bf16.mxu0 %v666_v38 }
 0x306   :  { %669 = vmatpush3.bf16.msra.mxu0 %v666_v38 }
 0x3d0   :  { %v372_v41 = vpop.f32.mrb[10].mxu1 }
 0x3d1   :  { %v387_v42 = vmul.f32 %v386_v39, %v372_v41  ;;  %v374_v43 = vpop.f32.mrb[11].mxu1 }
 0x3d3   :  { %v389_v46 = vsub.f32 %v790_v48, %v387_v42 }
 0x3d4   :  { %v378_v47 = vpop.f32.mrb[12].mxu1 }
 0x3d5   :  { %v395_v49 = vmul.f32 %v394_v44, %v389_v46  ;;  %v388_v51 = vmul.f32 %v386_v39, %v378_v47  ;;  %v380_v52 = vpop.f32.mrb[13].mxu1 }
 0x3d7   :  { %v397_v54 = vmul.f32 %v395_v49, %v374_v43  ;;  %v390_v55 = vsub.f32 %v792_v50, %v388_v51 }
 0x3d9   :  { %v396_v56 = vmul.f32 %v394_v44, %v390_v55  ;;  %v403_v57 = vadd.f32 %v402_v53, %v397_v54 }
 0x3db   :  { %v398_v58 = vmul.f32 %v396_v56, %v380_v52  ;;  %405 = vst [vmem:[%s903_s9] sm:$0xff] %v403_v57  ;;  %631 = vmatprep.mubr.f32.mxu0 %v403_v57 }
 0x3dd   :  { %v404_v59 = vadd.f32 %v402_v53, %v398_v58 }
 0x3df   :  { %406 = vst [vmem:[%s903_s9 + $0x8] sm:$0xff] %v404_v59  ;;  %632 = vmatmul.mubr.f32.vlgmr.msra.gmra.mrb[0].mxu0 %v404_v59 }
 0x4b2   :  { %v633_v48 = vpop.f32.mrb[0].mxu0 }
 0x4b3   :  { %507 = vperm.xlu0 %674, %v633_v48   ;;  %v489_v60 = vpop.f32.mrb[1].mxu0 }
 0x4b4   :  { %502 = vperm.xlu1 %673, %v489_v60  }
 0x532   :  { %v508_v50 = vpop.permute.xlu0 %507 }
 0x533   :  { %v511_v61 = vsel %vm499_vm9, %v508_v50, -1e+30  ;;  %v503_v62 = vpop.permute.xlu1 %502 }
 0x534   :  { %v513_v63 = vsel %vm39_vm0, %v511_v61, -inf  ;;  %v510_v3 = vsel %vm498_vm10, %v503_v62, -1e+30 }
 0x535   :  { %v512_v4 = vsel %vm39_vm0, %v510_v3, -inf }
 0x536   :  { %v514_v5 = vmax.f32 %v512_v4, %v513_v63 }
 0x538   :  { %v515_v6 = vrot.slane %v514_v5, 4 }
 0x53a   :  { %v516_v7 = vmax.f32 %v514_v5, %v515_v6 }
 0x53c   :  { %v517_v8 = vrot.slane %v516_v7, 2 }
 0x53e   :  { %v518_v9 = vmax.f32 %v516_v7, %v517_v8 }
 0x540   :  { %v519_v10 = vrot.slane %v518_v9, 1 }
 0x542   :  { %v520_v11 = vmax.f32 %v518_v9, %v519_v10 }
 0x544   :  { %v521_v12 = vsub.f32 %v510_v3, %v520_v11  ;;  %v522_v13 = vsub.f32 %v511_v61, %v520_v11 }
 0x546   :  { %v523_v14 = vmul.f32 1.442695, %v521_v12  ;;  %v525_v15 = vmul.f32 1.442695, %v522_v13 }
 0x548   :  { %683 = vpow2.f32 %v523_v14 }
 0x549   :  { %685 = vpow2.f32 %v525_v15 }
 0x552   :  { %v684_v16 = vpop.eup %683 }
 0x553   :  { %v686_v17 = vpop.eup %685  ;;  %v527_v18 = vsel %vm498_vm10, %v684_v16, 0.0 }
 0x554   :  { %v528_v19 = vsel %vm499_vm9, %v686_v17, 0.0  ;;  %v529_v20 = vsel %vm39_vm0, %v527_v18, 0.0 }
 0x555   :  { %v530_v21 = vsel %vm39_vm0, %v528_v19, 0.0 }
 0x556   :  { %v531_v22 = vadd.f32 %v530_v21, %v529_v20 }
 0x558   :  { %v532_v23 = vrot.slane %v531_v22, 4 }
 0x55a   :  { %v533_v24 = vadd.f32 %v532_v23, %v531_v22 }
 0x55c   :  { %v534_v25 = vrot.slane %v533_v24, 2 }
 0x55e   :  { %v535_v26 = vadd.f32 %v534_v25, %v533_v24 }
 0x560   :  { %v536_v27 = vrot.slane %v535_v26, 1 }
 0x562   :  { %v537_v28 = vadd.f32 %v536_v27, %v535_v26 }
 0x564   :  { %v538_v29 = vadd.f32 1e-16, %v537_v28 }
 0x566   :  { %687 = vrcp.f32 %v538_v29 }
 0x570   :  { %v688_v30 = vpop.eup %687 }
 0x571   :  { %v541_v31 = vmul.f32 %v688_v30, %v527_v18  ;;  %v542_v32 = vmul.f32 %v688_v30, %v528_v19 }
 0x573   :  { %v543_v33 = vadd.f32 0.5, %v541_v31  ;;  %v544_v2 = vadd.f32 0.5, %v542_v32 }
 0x575   :  { %v545_v34 = vsel %vm498_vm10, %v543_v33, 0.0  ;;  %v546_v35 = vsel %vm499_vm9, %v544_v2, 0.0 }
 0x576   :  { %547 = vst.msk [vmem:[%s904_s10] sm:$0xff] %vm39_vm0, %v545_v34  ;;  %548 = vst.msk [vmem:[%s904_s10 + $0x8] sm:$0xff] %vm39_vm0, %v546_v35 }

// kernel: forward.5
= control target key start
LH: loop header
LB: loop body
LE: loop exit
PB: predicated region body
PF: predicated region fallthrough
CT: control target
= control target key end

     0   :  { %vm39_vm0 = vcmask 130048   ;;  %v723_v2 = vmov 0.0   ;;  %vm724_vm1 = vmmov 0   ;;  %v725_v25 = vmov 0   ;;  %s998_s0 = inlined_call_operand.vmem [shape: f32[16,16], index: 0, kind: input, shape index: {}]   ;;  %s999_s5 = inlined_call_operand.vmem [shape: f32[128,128], index: 5, kind: input, shape index: {}]   ;;  %s1000_s1 = inlined_call_operand.vmem [shape: f32[16,1], index: 1, kind: input, shape index: {}]   ;;  %s1001_s2 = inlined_call_operand.vmem [shape: f32[16,128], index: 2, kind: input, shape index: {}]   ;;  %s1002_s3 = inlined_call_operand.vmem [shape: f32[3,16], index: 3, kind: input, shape index: {}]   ;;  %s1003_s6 = inlined_call_operand.vmem [shape: f32[1,128], index: 6, kind: input, shape index: {}]   ;;  %s1004_s7 = inlined_call_operand.vmem [shape: f32[3,128], index: 7, kind: input, shape index: {}]   ;;  %s1005_s8 = inlined_call_operand.vmem [shape: f32[128,1], index: 8, kind: input, shape index: {}]   ;;  %s1006_s4 = inlined_call_operand.vmem [shape: f32[16,3], index: 4, kind: input, shape index: {}]   ;;  %s1007_s9 = inlined_call_operand.vmem [shape: f32[16,128], index: 9, kind: output, shape index: {0}]   ;;  %s1008_s10 = inlined_call_operand.vmem [shape: f32[16,16], index: 10, kind: output, shape index: {1}]  }
   0x1   :  { %v784_v0 = vld [vmem:[%s998_s0] sm:$0xff]  ;;  %v789_v1 = vld [vmem:[%s998_s0 + $0x8] sm:$0xff]  ;;  %607 = vmatprep.subr.bf16.mxu0 %v723_v2  ;;  %623 = vmatprep.mubr.msk.bf16.mxu0 %vm724_vm1, %v723_v2  ;;  %v59_v6 = vld [vmem:[%s999_s5 + $0x10] sm:$0xff]  ;;  %vm208_vm4 = vcmask 124928   ;;  %vm313_vm5 = vcmask 1042432   ;;  %vm306_vm6 = vcmask 23552  }
   0x2   :  { %v57_v3 = vld [vmem:[%s999_s5] sm:$0xff]  ;;  %v40_v4 = vsel %vm39_vm0, %v784_v0, 0.0  ;;  %v58_v5 = vld [vmem:[%s999_s5 + $0x8] sm:$0xff]  ;;  %v60_v7 = vld [vmem:[%s999_s5 + $0x18] sm:$0xff]  ;;  %285 = vmatprep.mubr.f32.mxu1 %v723_v2  ;;  %v43_v9 = vsel %vm39_vm0, %v789_v1, 0.0  ;;  %707 = vset.pattern.permute.xlu1 %v725_v25  ;;  %v134_v52 = vpack.c.bf16 %v789_v1, %v784_v0  ;;  %vm513_vm7 = vcmp.gt.f32.partialorder %v789_v1, 0.5 }
   0x3   :  { %41 = vadd.xlane.f32.xlu0 %v40_v4  ;;  %v73_v8 = vpack.c.bf16 %v58_v5, %v57_v3  ;;  %v74_v10 = vpack.c.bf16 %v60_v7, %v59_v6  ;;  %v61_v11 = vld [vmem:[%s999_s5 + $0x20] sm:$0xff]  ;;  %v62_v12 = vld [vmem:[%s999_s5 + $0x28] sm:$0xff]  ;;  %v63_v14 = vld [vmem:[%s999_s5 + $0x30] sm:$0xff]  ;;  %vm512_vm8 = vcmp.gt.f32.partialorder %v784_v0, 0.5 }
   0x4   :  { %v75_v13 = vpack.c.bf16 %v62_v12, %v61_v11  ;;  %v64_v15 = vld [vmem:[%s999_s5 + $0x38] sm:$0xff]  ;;  %v65_v17 = vld [vmem:[%s999_s5 + $0x40] sm:$0xff]  ;;  %v66_v18 = vld [vmem:[%s999_s5 + $0x48] sm:$0xff]  ;;  %708 = vset.pattern.permute.xlu0 %v725_v25 }
   0x5   :  { %608 = vmatpush3.bf16.msra.mxu0 %v73_v8  ;;  %v76_v16 = vpack.c.bf16 %v64_v15, %v63_v14  ;;  %v77_v19 = vpack.c.bf16 %v66_v18, %v65_v17  ;;  %v67_v20 = vld [vmem:[%s999_s5 + $0x50] sm:$0xff]  ;;  %v68_v21 = vld [vmem:[%s999_s5 + $0x58] sm:$0xff]  ;;  %v69_v23 = vld [vmem:[%s999_s5 + $0x60] sm:$0xff]  ;;  %v296_v17 = vlaneseq }
   0x6   :  { %609 = vmatprep.subr.bf16.mxu0 %v723_v2  ;;  %v78_v22 = vpack.c.bf16 %v68_v21, %v67_v20  ;;  %v70_v24 = vld [vmem:[%s999_s5 + $0x68] sm:$0xff]  ;;  %v71_v27 = vld [vmem:[%s999_s5 + $0x70] sm:$0xff]  ;;  %v72_v28 = vld [vmem:[%s999_s5 + $0x78] sm:$0xff] }
   0x7   :  { %44 = vadd.xlane.f32.xlu0 %v43_v9  ;;  %v79_v26 = vpack.c.bf16 %v70_v24, %v69_v23  ;;  %v37_v29 = vld [vmem:[%s1000_s1] sm:$0xff]  ;;  %v80_v30 = vpack.c.bf16 %v72_v28, %v71_v27  ;;  %v55_v32 = vld [vmem:[%s1001_s2 + $0x8] sm:$0xff]  ;;  %v896_v20 = vshrl.u32 %v296_v17, 7 }
   0x8   :  { %v54_v31 = vld [vmem:[%s1001_s2] sm:$0xff]  ;;  %v38_v36 = vld [vmem:[%s1000_s1 + $0x8] sm:$0xff] }
   0x9   :  { %610 = vmatpush3.bf16.msra.mxu0 %v74_v10  ;;  %v56_v33 = vpack.c.bf16 %v55_v32, %v54_v31  ;;  %v205_v53 = vld [vmem:[%s1002_s3] sm:$0x7] }
   0xa   :  { %611 = vmatprep.subr.bf16.mxu0 %v723_v2  ;;  %v209_v54 = vsel %vm208_vm4, %v205_v53, 0.0  ;;  %v572_v62 = vld [vmem:[%s1003_s6] ss:$0 sm:$0xff] }
   0xb   :  { %v893_v18 = vld [vmem:[%s1004_s7] sm:$0x7] }
   0xd   :  { %612 = vmatpush3.bf16.msra.mxu0 %v75_v13 }
   0xe   :  { %613 = vmatprep.subr.bf16.mxu0 %v723_v2 }
  0x11   :  { %614 = vmatpush3.bf16.msra.mxu0 %v76_v16 }
  0x12   :  { %615 = vmatprep.subr.bf16.mxu0 %v723_v2 }
  0x15   :  { %616 = vmatpush3.bf16.msra.mxu0 %v77_v19  ;;  %v294_v19 = vsub.f32 2.0, %v893_v18 }
  0x16   :  { %617 = vmatprep.subr.bf16.mxu0 %v723_v2 }
  0x17   :  { %v295_v21 = vmul.f32 %v294_v19, %v893_v18 }
  0x19   :  { %618 = vmatpush3.bf16.msra.mxu0 %v78_v22  ;;  %v298_v22 = vsub.s32 2, %v896_v20 }
  0x1a   :  { %619 = vmatprep.subr.bf16.mxu0 %v723_v2 }
  0x1b   :  { %v299_v24 = vrot.slane %v295_v21, %v298_v22 }
  0x1d   :  { %620 = vmatpush3.bf16.msra.mxu0 %v79_v26  ;;  %138 = vperm.xlu0 %708, %v37_v29  }
  0x1e   :  { %621 = vmatprep.subr.bf16.mxu0 %v723_v2 }
  0x21   :  { %622 = vmatpush3.bf16.msra.mxu0 %v80_v30 }
  0x22   :  { %627 = vmatprep.subr.bf16.mxu0 %v723_v2 }
  0x24   :  { %624 = vmatmul.mubr.bf16.vlgmr.msra.gmra.mrb[0].mxu0 %v56_v33 }
  0x25   :  { %629 = vmatprep.mubr.msk.bf16.mxu0 %vm724_vm1, %v723_v2 }
  0x90   :  { %v42_v34 = vpop.xlane.xlu0 %41 }
  0x91   :  { %v46_v35 = vadd.f32 %v42_v34, %v37_v29  ;;  %v421_v34 = vld [vmem:[%s1005_s8] sm:$0xff] }
  0x93   :  { %709 = vrsqrt.f32 %v46_v35  ;;  %vm48_vm2 = vcmp.gt.f32.partialorder %v46_v35, 0.0  ;;  %v422_v35 = vld [vmem:[%s1005_s8 + $0x8] sm:$0xff] }
  0x94   :  { %v45_v37 = vpop.xlane.xlu0 %44 }
  0x95   :  { %v47_v38 = vadd.f32 %v45_v37, %v38_v36  ;;  %v424_v37 = vld [vmem:[%s1005_s8 + $0x18] sm:$0xff] }
  0x97   :  { %711 = vrsqrt.f32 %v47_v38  ;;  %vm49_vm3 = vcmp.gt.f32.partialorder %v47_v38, 0.0  ;;  %v672_v38 = vpack.c.bf16 %v422_v35, %v421_v34 }
  0x9c   :  { %v139_v55 = vpop.permute.xlu0 %138 }
  0x9d   :  { %v710_v39 = vpop.eup %709 }
  0x9e   :  { %v52_v40 = vsel %vm48_vm2, %v710_v39, 0.0 }
  0x9f   :  { %124 = vperm.xlu1 %707, %v52_v40   ;;  %v206_v40 = vld [vmem:[%s1006_s4] sm:$0xff] }
  0xa1   :  { %v712_v41 = vpop.eup %711 }
  0xa2   :  { %v53_v42 = vsel %vm49_vm3, %v712_v41, 0.0 }
  0xa3   :  { %129 = vperm.xlu1 %707, %v53_v42   ;;  %v425_v42 = vld [vmem:[%s1005_s8 + $0x20] sm:$0xff] }
  0xa7   :  { %143 = vperm.xlu1 %707, %v38_v36   ;;  %v423_v36 = vld [vmem:[%s1005_s8 + $0x10] sm:$0xff] }
  0xa8   :  { %v676_v41 = vpack.c.bf16 %v424_v37, %v423_v36 }
  0xcb   :  { %210 = vadd.xlane.f32.xlu1 %v209_v54  ;;  %v433_v54 = vld [vmem:[%s1005_s8 + $0x60] sm:$0xff] }
  0xf7   :  { %v115_v43 = vpop.f32.mrb[0].mxu0 }
  0xf8   :  { %v625_v44 = vpop.f32.mrb[1].mxu0 }
  0xf9   :  { %v118_v45 = vpop.f32.mrb[2].mxu0  ;;  %v207_v44 = vld [vmem:[%s1006_s4 + $0x8] sm:$0xff] }
  0xfa   :  { %v626_v46 = vpop.f32.mrb[3].mxu0 }
  0xfb   :  { %v427_v46 = vld [vmem:[%s1005_s8 + $0x30] sm:$0xff] }
 0x11e   :  { %v125_v47 = vpop.permute.xlu1 %124 }
 0x11f   :  { %v132_v49 = vmul.f32 %v125_v47, %v115_v43  ;;  %v426_v43 = vld [vmem:[%s1005_s8 + $0x28] sm:$0xff] }
 0x121   :  { %v146_v57 = vmul.f32 %v139_v55, %v132_v49  ;;  %v434_v55 = vld [vmem:[%s1005_s8 + $0x68] sm:$0xff] }
 0x122   :  { %v130_v48 = vpop.permute.xlu1 %129 }
 0x123   :  { %v133_v50 = vmul.f32 %v130_v48, %v118_v45  ;;  %v680_v45 = vpack.c.bf16 %v426_v43, %v425_v42 }
 0x125   :  { %v135_v51 = vpack.c.bf16 %v133_v50, %v132_v49  ;;  %v430_v49 = vld [vmem:[%s1005_s8 + $0x48] sm:$0xff] }
 0x126   :  { %v144_v56 = vpop.permute.xlu1 %143 }
 0x127   :  { %628 = vmatpush3.bf16.msra.mxu0 %v135_v51  ;;  %v147_v59 = vmul.f32 %v144_v56, %v133_v50  ;;  %v431_v51 = vld [vmem:[%s1005_s8 + $0x50] sm:$0xff]  ;;  %v696_v56 = vpack.c.bf16 %v434_v55, %v433_v54 }
 0x12a   :  { %630 = vmatmul.mubr.msk.bf16.vlgmr.msra.gmra.mrb[4].mxu0 %vm39_vm0, %v134_v52  ;;  %v432_v52 = vld [vmem:[%s1005_s8 + $0x58] sm:$0xff] }
 0x158   :  { %v211_v15 = vpop.xlane.xlu1 %210 }
 0x159   :  { %v212_v16 = vmax.f32 %v211_v15, 1.0 }
 0x15b   :  { %713 = vrcp.f32 %v212_v16 }
 0x165   :  { %v714_v23 = vpop.eup %713 }
 0x1fd   :  { %v185_v58 = vpop.f32.mrb[4].mxu0 }
 0x1fe   :  { %v186_v60 = vadd.f32 %v185_v58, %v146_v57  ;;  %v631_v61 = vpop.f32.mrb[5].mxu0  ;;  %v435_v57 = vld [vmem:[%s1005_s8 + $0x70] sm:$0xff]  ;;  %v436_v58 = vld [vmem:[%s1005_s8 + $0x78] sm:$0xff] }
 0x1ff   :  { %v188_v63 = vpop.f32.mrb[6].mxu0  ;;  %v407_v61 = vsub.s32 0, %v896_v20 }
 0x200   :  { %v192_v3 = vmul.f32 %v186_v60, %v125_v47  ;;  %v189_v4 = vadd.f32 %v188_v63, %v147_v59  ;;  %v632_v5 = vpop.f32.mrb[7].mxu0  ;;  %v428_v47 = vld [vmem:[%s1005_s8 + $0x38] sm:$0xff]  ;;  %v700_v59 = vpack.c.bf16 %v436_v58, %v435_v57  ;;  %v400_v60 = vrot.slane %v893_v18, %v298_v22 }
 0x201   :  { %v415_v5 = vsub.s32 1, %v896_v20 }
 0x202   :  { %v201_v6 = vadd.f32 %v572_v62, %v192_v3  ;;  %v193_v7 = vmul.f32 %v189_v4, %v130_v48  ;;  %v684_v48 = vpack.c.bf16 %v428_v47, %v427_v46  ;;  %v408_v4 = vrot.slane %v893_v18, %v407_v61 }
 0x204   :  { %v878_v8 = vmax.f32 %v201_v6, 0.0  ;;  %v202_v9 = vadd.f32 %v572_v62, %v193_v7 }
 0x206   :  { %v880_v10 = vmax.f32 %v202_v9, 0.0  ;;  %v216_v11 = vmul.f32 %v878_v8, %v878_v8 }
 0x208   :  { %v217_v12 = vmul.f32 %v880_v10, %v880_v10  ;;  %v670_v14 = vpack.c.bf16 %v880_v10, %v878_v8 }
 0x20a   :  { %v668_v13 = vpack.c.bf16 %v217_v12, %v216_v11  ;;  %v416_v11 = vrot.slane %v893_v18, %v415_v5 }
 0x20c   :  { %669 = vmatprep.subr.bf16.mxu1 %v668_v13 }
 0x20d   :  { %671 = vmatpush1.bf16.msra.mxu1 %v670_v14 }
 0x210   :  { %573 = vmatmul.mubr.msk.f32.vlgmr.msra.gmra.mrb[0].mxu1 %vm39_vm0, %v205_v53  ;;  %v692_v53 = vpack.c.bf16 %v432_v52, %v431_v51 }
 0x211   :  { %384 = vmatprep.mubr.f32.mxu1 %v723_v2 }
 0x2e3   :  { %v287_v25 = vpop.f32.mrb[0].mxu1 }
 0x2e4   :  { %v292_v26 = vmul.f32 %v714_v23, %v287_v25  ;;  %v289_v27 = vpop.f32.mrb[1].mxu1 }
 0x2e5   :  { %v293_v29 = vmul.f32 %v714_v23, %v289_v27 }
 0x2e6   :  { %v300_v28 = vmul.f32 %v299_v24, %v292_v26 }
 0x2e8   :  { %v301_v30 = vmul.f32 %v300_v28, %v292_v26 }
 0x2ea   :  { %v302_v31 = vsub.f32 %v293_v29, %v301_v30 }
 0x2ec   :  { %v303_v32 = vmax.f32 %v302_v31, 0.0 }
 0x2ee   :  { %v304_v33 = vadd.f32 1e-05, %v303_v32 }
 0x2f0   :  { %715 = vrsqrt.f32 %v304_v33 }
 0x2fa   :  { %v716_v39 = vpop.eup %715 }
 0x2fb   :  { %574 = vmatprep.subr.msk.mxu1 %vm313_vm5, %v716_v39 }
 0x2fc   :  { %575 = vmatpush1.msk.msra.mxu1 %vm313_vm5, %v292_v26 }
 0x2fd   :  { %576 = vmatmul.mubr.msk.f32.vlgmr.msra.gmra.mrb[2].mxu1 %vm306_vm6, %v206_v40  ;;  %673 = vmatprep.subr.bf16.mxu1 %v672_v38 }
 0x2fe   :  { %390 = vmatprep.mubr.f32.mxu1 %v723_v2  ;;  %675 = vmatpush3.bf16.msra.mxu1 %v672_v38  ;;  %v429_v2 = vld [vmem:[%s1005_s8 + $0x40] sm:$0xff] }
 0x2ff   :  { %677 = vmatprep.subr.bf16.mxu1 %v676_v41  ;;  %v688_v50 = vpack.c.bf16 %v430_v49, %v429_v2 }
 0x301   :  { %577 = vmatmul.mubr.msk.f32.gmra.mrb[4].mxu1 %vm306_vm6, %v207_v44 }
 0x302   :  { %679 = vmatpush3.bf16.msra.mxu1 %v676_v41 }
 0x303   :  { %681 = vmatprep.subr.bf16.mxu1 %v680_v45 }
 0x306   :  { %683 = vmatpush3.bf16.msra.mxu1 %v680_v45 }
 0x307   :  { %685 = vmatprep.subr.bf16.mxu1 %v684_v48 }
 0x30a   :  { %687 = vmatpush3.bf16.msra.mxu1 %v684_v48 }
 0x30b   :  { %689 = vmatprep.subr.bf16.mxu1 %v688_v50 }
 0x30e   :  { %691 = vmatpush3.bf16.msra.mxu1 %v688_v50 }
 0x30f   :  { %693 = vmatprep.subr.bf16.mxu1 %v692_v53 }
 0x312   :  { %695 = vmatpush3.bf16.msra.mxu1 %v692_v53 }
 0x313   :  { %697 = vmatprep.subr.bf16.mxu1 %v696_v56 }
 0x316   :  { %699 = vmatpush3.bf16.msra.mxu1 %v696_v56 }
 0x317   :  { %701 = vmatprep.subr.bf16.mxu1 %v700_v59 }
 0x31a   :  { %703 = vmatpush3.bf16.msra.mxu1 %v700_v59 }
 0x3d0   :  { %v386_v62 = vpop.f32.mrb[2].mxu1 }
 0x3d1   :  { %v401_v63 = vmul.f32 %v400_v60, %v386_v62  ;;  %v388_v3 = vpop.f32.mrb[3].mxu1 }
 0x3d3   :  { %v403_v6 = vsub.f32 %v878_v8, %v401_v63 }
 0x3d4   :  { %v392_v7 = vpop.f32.mrb[4].mxu1 }
 0x3d5   :  { %v409_v9 = vmul.f32 %v408_v4, %v403_v6  ;;  %v402_v12 = vmul.f32 %v400_v60, %v392_v7  ;;  %v394_v13 = vpop.f32.mrb[5].mxu1 }
 0x3d7   :  { %v411_v14 = vmul.f32 %v409_v9, %v388_v3  ;;  %v404_v15 = vsub.f32 %v880_v10, %v402_v12 }
 0x3d9   :  { %v417_v16 = vadd.f32 %v416_v11, %v411_v14  ;;  %v410_v17 = vmul.f32 %v408_v4, %v404_v15 }
 0x3db   :  { %419 = vst [vmem:[%s1007_s9] sm:$0xff] %v417_v16  ;;  %v412_v19 = vmul.f32 %v410_v17, %v394_v13  ;;  %665 = vmatprep.mubr.f32.mxu1 %v417_v16 }
 0x3dd   :  { %v418_v20 = vadd.f32 %v416_v11, %v412_v19 }
 0x3df   :  { %420 = vst [vmem:[%s1007_s9 + $0x8] sm:$0xff] %v418_v20  ;;  %666 = vmatmul.mubr.f32.vlgmr.msra.gmra.mrb[6].mxu1 %v418_v20 }
 0x4b2   :  { %v667_v8 = vpop.f32.mrb[6].mxu1 }
 0x4b3   :  { %521 = vperm.xlu0 %708, %v667_v8   ;;  %v503_v18 = vpop.f32.mrb[7].mxu1 }
 0x4b4   :  { %516 = vperm.xlu1 %707, %v503_v18  }
 0x532   :  { %v522_v10 = vpop.permute.xlu0 %521 }
 0x533   :  { %v525_v21 = vsel %vm513_vm7, %v522_v10, -1e+30  ;;  %v517_v22 = vpop.permute.xlu1 %516 }
 0x534   :  { %v527_v23 = vsel %vm39_vm0, %v525_v21, -inf  ;;  %v524_v24 = vsel %vm512_vm8, %v517_v22, -1e+30 }
 0x535   :  { %v526_v25 = vsel %vm39_vm0, %v524_v24, -inf }
 0x536   :  { %v528_v26 = vmax.f32 %v526_v25, %v527_v23 }
 0x538   :  { %v529_v27 = vrot.slane %v528_v26, 4 }
 0x53a   :  { %v530_v28 = vmax.f32 %v528_v26, %v529_v27 }
 0x53c   :  { %v531_v29 = vrot.slane %v530_v28, 2 }
 0x53e   :  { %v532_v30 = vmax.f32 %v530_v28, %v531_v29 }
 0x540   :  { %v533_v31 = vrot.slane %v532_v30, 1 }
 0x542   :  { %v534_v32 = vmax.f32 %v532_v30, %v533_v31 }
 0x544   :  { %v535_v33 = vsub.f32 %v524_v24, %v534_v32  ;;  %v536_v34 = vsub.f32 %v525_v21, %v534_v32 }
 0x546   :  { %v537_v35 = vmul.f32 1.442695, %v535_v33  ;;  %v539_v36 = vmul.f32 1.442695, %v536_v34 }
 0x548   :  { %717 = vpow2.f32 %v537_v35 }
 0x549   :  { %719 = vpow2.f32 %v539_v36 }
 0x552   :  { %v718_v37 = vpop.eup %717 }
 0x553   :  { %v720_v38 = vpop.eup %719  ;;  %v541_v39 = vsel %vm512_vm8, %v718_v37, 0.0 }
 0x554   :  { %v542_v40 = vsel %vm513_vm7, %v720_v38, 0.0  ;;  %v543_v41 = vsel %vm39_vm0, %v541_v39, 0.0 }
 0x555   :  { %v544_v42 = vsel %vm39_vm0, %v542_v40, 0.0 }
 0x556   :  { %v545_v43 = vadd.f32 %v544_v42, %v543_v41 }
 0x558   :  { %v546_v44 = vrot.slane %v545_v43, 4 }
 0x55a   :  { %v547_v45 = vadd.f32 %v546_v44, %v545_v43 }
 0x55c   :  { %v548_v46 = vrot.slane %v547_v45, 2 }
 0x55e   :  { %v549_v47 = vadd.f32 %v548_v46, %v547_v45 }
 0x560   :  { %v550_v48 = vrot.slane %v549_v47, 1 }
 0x562   :  { %v551_v2 = vadd.f32 %v550_v48, %v549_v47 }
 0x564   :  { %v552_v49 = vadd.f32 1e-16, %v551_v2 }
 0x566   :  { %721 = vrcp.f32 %v552_v49 }
 0x570   :  { %v722_v50 = vpop.eup %721 }
 0x571   :  { %v555_v51 = vmul.f32 %v722_v50, %v541_v39  ;;  %v556_v52 = vmul.f32 %v722_v50, %v542_v40 }
 0x573   :  { %v557_v53 = vadd.f32 0.5, %v555_v51  ;;  %v558_v54 = vadd.f32 0.5, %v556_v52 }
 0x575   :  { %v559_v55 = vsel %vm512_vm8, %v557_v53, 0.0  ;;  %v560_v56 = vsel %vm513_vm7, %v558_v54, 0.0 }
 0x576   :  { %561 = vst.msk [vmem:[%s1008_s10] sm:$0xff] %vm39_vm0, %v559_v55  ;;  %562 = vst.msk [vmem:[%s1008_s10 + $0x8] sm:$0xff] %vm39_vm0, %v560_v56 }

// kernel: forward.7
= control target key start
LH: loop header
LB: loop body
LE: loop exit
PB: predicated region body
PF: predicated region fallthrough
CT: control target
= control target key end

     0   :  { %14 = vsyncpa [#allocation3], 0  ;;  %v488_v2 = vmov 0.0|0.0   ;;  %vm489_vm0 = vmmov 0   ;;  %v490_v4 = vmov 0.0   ;;  %vm36_vm1 = vcmask 123904   ;;  %s717_s0 = inlined_call_operand.vmem [shape: f32[16,128], index: 0, kind: input, shape index: {}]   ;;  %s718_s1 = inlined_call_operand.vmem [shape: f32[2,16], index: 1, kind: input, shape index: {}]   ;;  %s719_s2 = inlined_call_operand.vmem [shape: f32[16,2], index: 2, kind: input, shape index: {}]   ;;  %s720_s3 = inlined_call_operand.vmem [shape: f32[128,128], index: 3, kind: input, shape index: {}]   ;;  %s721_s4 = inlined_call_operand.vmem [shape: f32[1,128], index: 4, kind: input, shape index: {}]   ;;  %s722_s5 = inlined_call_operand.vmem [shape: f32[128,4], index: 5, kind: input, shape index: {}]   ;;  %s723_s6 = inlined_call_operand.vmem [shape: f32[1,4], index: 6, kind: input, shape index: {}]   ;;  %s724_s7 = inlined_call_operand.hbm [shape: f32[2,4], index: 7, kind: output, shape index: {0}]   ;;  %s725_s8 = inlined_call_operand.hbm [shape: f32[2,4], index: 8, kind: output, shape index: {1}]  }
   0x1   :  { %v543_v0 = vld [vmem:[%s717_s0] sm:$0xff]  ;;  %v548_v1 = vld [vmem:[%s717_s0 + $0x8] sm:$0xff]  ;;  %420 = vmatprep.subr.bf16.mxu0 %v488_v2  ;;  %377 = vmatprep.mubr.msk.f32.mxu0 %vm489_vm0, %v490_v4  ;;  %v491_v8 = vmov 0  }
   0x2   :  { %v421_v3 = vpack.c.bf16 %v548_v1, %v543_v0  ;;  %v33_v5 = vld [vmem:[%s718_s1] sm:$0x3]  ;;  %v35_v6 = vld [vmem:[%s719_s2 + $0x8] sm:$0xff]  ;;  %431 = vset.pattern.permute.xlu1 %v491_v8  ;;  %430 = vset.pattern.permute.xlu0 %v491_v8 }
   0x3   :  { %v37_v7 = vsel %vm36_vm1, %v33_v5, 0.0  ;;  %vm119_vm2 = vcmp.gt.f32.partialorder %v35_v6, 0.5  ;;  %v34_v9 = vld [vmem:[%s719_s2] sm:$0xff] }
   0x4   :  { %15 = vsyncpa [#allocation5], 0  ;;  %422 = vmatpush3.bf16.msra.mxu0 %v421_v3  ;;  %vm43_vm3 = vcmask 130048   ;;  %38 = vadd.xlane.f32.xlu0 %v37_v7  ;;  %v121_v10 = vsel %vm119_vm2, 1, %v491_v8  ;;  %vm118_vm4 = vcmp.gt.f32.partialorder %v34_v9, 0.5  ;;  %v492_v12 = vmov 1  }
   0x5   :  { %126 = vperm.xlu1 %431, %v121_v10   ;;  %380 = vmatprep.subr.bf16.mxu1 %v490_v4  ;;  %v120_v11 = vsel %vm118_vm4, 1, %v491_v8  ;;  %v164_v13 = vld [vmem:[%s720_s3] sm:$0xff]  ;;  %v165_v14 = vld [vmem:[%s720_s3 + $0x8] sm:$0xff]  ;;  %v166_v15 = vld [vmem:[%s720_s3 + $0x10] sm:$0xff]  ;;  %vm156_vm9 = vcmask 1040384   ;;  %vm307_vm11 = vcmask 25600  }
   0x6   :  { %396 = vmatprep.mubr.msk.bf16.mxu1 %vm489_vm0, %v490_v4  ;;  %400 = vmatprep.subr.bf16.mxu0 %v490_v4  ;;  %v180_v16 = vpack.c.bf16 %v165_v14, %v164_v13  ;;  %v167_v17 = vld [vmem:[%s720_s3 + $0x18] sm:$0xff]  ;;  %v168_v19 = vld [vmem:[%s720_s3 + $0x20] sm:$0xff]  ;;  %v169_v20 = vld [vmem:[%s720_s3 + $0x28] sm:$0xff] }
   0x7   :  { %378 = vmatmul.mubr.msk.f32.vlgmr.msra.gmra.mrb[0].mxu0 %vm43_vm3, %v33_v5  ;;  %v181_v18 = vpack.c.bf16 %v167_v17, %v166_v15  ;;  %v182_v21 = vpack.c.bf16 %v169_v20, %v168_v19  ;;  %v170_v22 = vld [vmem:[%s720_s3 + $0x30] sm:$0xff]  ;;  %v171_v23 = vld [vmem:[%s720_s3 + $0x38] sm:$0xff]  ;;  %v172_v25 = vld [vmem:[%s720_s3 + $0x40] sm:$0xff] }
   0x8   :  { %416 = vmatprep.mubr.msk.bf16.mxu0 %vm489_vm0, %v490_v4  ;;  %381 = vmatpush3.bf16.msra.mxu1 %v180_v16  ;;  %v183_v24 = vpack.c.bf16 %v171_v23, %v170_v22  ;;  %v173_v26 = vld [vmem:[%s720_s3 + $0x48] sm:$0xff]  ;;  %v174_v28 = vld [vmem:[%s720_s3 + $0x50] sm:$0xff]  ;;  %v175_v29 = vld [vmem:[%s720_s3 + $0x58] sm:$0xff] }
   0x9   :  { %432 = vset.pattern.permute.xlu1 %v492_v12  ;;  %382 = vmatprep.subr.bf16.mxu1 %v490_v4  ;;  %v184_v27 = vpack.c.bf16 %v173_v26, %v172_v25  ;;  %v185_v30 = vpack.c.bf16 %v175_v29, %v174_v28  ;;  %v176_v31 = vld [vmem:[%s720_s3 + $0x60] sm:$0xff]  ;;  %v177_v32 = vld [vmem:[%s720_s3 + $0x68] sm:$0xff]  ;;  %v178_v34 = vld [vmem:[%s720_s3 + $0x70] sm:$0xff] }
   0xa   :  { %140 = vperm.xlu1 %432, %v120_v11   ;;  %v186_v33 = vpack.c.bf16 %v177_v32, %v176_v31  ;;  %v179_v35 = vld [vmem:[%s720_s3 + $0x78] sm:$0xff]  ;;  %v236_v37 = vld [vmem:[%s722_s5] sm:$0xff]  ;;  %v237_v38 = vld [vmem:[%s722_s5 + $0x8] sm:$0xff] }
   0xb   :  { %v187_v36 = vpack.c.bf16 %v179_v35, %v178_v34  ;;  %v238_v39 = vld [vmem:[%s722_s5 + $0x10] sm:$0xff]  ;;  %v252_v40 = vpack.c.bf16 %v237_v38, %v236_v37  ;;  %v239_v41 = vld [vmem:[%s722_s5 + $0x18] sm:$0xff]  ;;  %v240_v43 = vld [vmem:[%s722_s5 + $0x20] sm:$0xff] }
   0xc   :  { %383 = vmatpush3.bf16.msra.mxu1 %v181_v18  ;;  %v253_v42 = vpack.c.bf16 %v239_v41, %v238_v39  ;;  %v241_v44 = vld [vmem:[%s722_s5 + $0x28] sm:$0xff]  ;;  %v242_v46 = vld [vmem:[%s722_s5 + $0x30] sm:$0xff]  ;;  %v243_v47 = vld [vmem:[%s722_s5 + $0x38] sm:$0xff] }
   0xd   :  { %384 = vmatprep.subr.bf16.mxu1 %v490_v4  ;;  %401 = vmatpush3.bf16.msra.mxu0 %v252_v40  ;;  %v254_v45 = vpack.c.bf16 %v241_v44, %v240_v43  ;;  %v255_v48 = vpack.c.bf16 %v243_v47, %v242_v46  ;;  %v244_v49 = vld [vmem:[%s722_s5 + $0x40] sm:$0xff]  ;;  %v245_v50 = vld [vmem:[%s722_s5 + $0x48] sm:$0xff]  ;;  %v246_v52 = vld [vmem:[%s722_s5 + $0x50] sm:$0xff] }
   0xe   :  { %143 = vperm.xlu1 %432, %v121_v10   ;;  %402 = vmatprep.subr.bf16.mxu0 %v490_v4  ;;  %v256_v51 = vpack.c.bf16 %v245_v50, %v244_v49  ;;  %v247_v53 = vld [vmem:[%s722_s5 + $0x58] sm:$0xff]  ;;  %v248_v55 = vld [vmem:[%s722_s5 + $0x60] sm:$0xff]  ;;  %v249_v56 = vld [vmem:[%s722_s5 + $0x68] sm:$0xff] }
   0xf   :  { %v257_v54 = vpack.c.bf16 %v247_v53, %v246_v52  ;;  %v258_v57 = vpack.c.bf16 %v249_v56, %v248_v55  ;;  %v250_v26 = vld [vmem:[%s722_s5 + $0x70] sm:$0xff]  ;;  %v350_v29 = vld [vmem:[%s721_s4] ss:$0 sm:$0xff]  ;;  %s493_s4 = smov [#allocation2]  }
  0x10   :  { %385 = vmatpush3.bf16.msra.mxu1 %v182_v21 }
  0x11   :  { %386 = vmatprep.subr.bf16.mxu1 %v490_v4  ;;  %403 = vmatpush3.bf16.msra.mxu0 %v253_v42 }
  0x12   :  { %404 = vmatprep.subr.bf16.mxu0 %v490_v4 }
  0x14   :  { %387 = vmatpush3.bf16.msra.mxu1 %v183_v24 }
  0x15   :  { %388 = vmatprep.subr.bf16.mxu1 %v490_v4  ;;  %405 = vmatpush3.bf16.msra.mxu0 %v254_v45 }
  0x16   :  { %406 = vmatprep.subr.bf16.mxu0 %v490_v4 }
  0x18   :  { %389 = vmatpush3.bf16.msra.mxu1 %v184_v27  ;;  %v251_v27 = vld [vmem:[%s722_s5 + $0x78] sm:$0xff]  ;;  %s327_s5 = sshll.u32 %s493_s4, 4  ;;  %s328_s5 = int_to_ptr.vmem [resolvable:$true] %s327_s5 }
  0x19   :  { %390 = vmatprep.subr.bf16.mxu1 %v490_v4  ;;  %407 = vmatpush3.bf16.msra.mxu0 %v255_v48  ;;  %v259_v28 = vpack.c.bf16 %v251_v27, %v250_v26  ;;  %p445_p1 = scmp.lt.s32.totalorder %s328_s5, %s328_s5 }
  0x1a   :  { %123 = vperm.xlu0 %430, %v120_v11   ;;  %408 = vmatprep.subr.bf16.mxu0 %v490_v4 }
  0x1c   :  { %391 = vmatpush3.bf16.msra.mxu1 %v185_v30 }
  0x1d   :  { %392 = vmatprep.subr.bf16.mxu1 %v490_v4  ;;  %409 = vmatpush3.bf16.msra.mxu0 %v256_v51 }
  0x1e   :  { %433 = vset.pattern.permute.xlu0 %v492_v12  ;;  %410 = vmatprep.subr.bf16.mxu0 %v490_v4 }
  0x20   :  { %393 = vmatpush3.bf16.msra.mxu1 %v186_v33 }
  0x21   :  { %394 = vmatprep.subr.bf16.mxu1 %v490_v4  ;;  %411 = vmatpush3.bf16.msra.mxu0 %v257_v54 }
  0x22   :  { %412 = vmatprep.subr.bf16.mxu0 %v490_v4 }
  0x24   :  { %395 = vmatpush3.bf16.msra.mxu1 %v187_v36  ;;  %v351_v36 = vld [vmem:[%s723_s6] ss:$0 sm:$0xff]  ;;  %s440_s6 = scalar_lea.vmem %s328_s5, 32 }
  0x25   :  { %413 = vmatpush3.bf16.msra.mxu0 %v258_v57  ;;  %p441_p0 = scmp.ne.s32.totalorder %s328_s5, %s440_s6  ;;  %p446_p2 = scmp.lt.s32.totalorder %s440_s6, %s440_s6 }
  0x26   :  { %414 = vmatprep.subr.bf16.mxu0 %v490_v4 }
  0x27   :  { %p447_p3 = por %p446_p2, %p445_p1 }
  0x29   :  { %415 = vmatpush3.bf16.msra.mxu0 %v259_v28  ;;  %p448_p4 = pnand %p447_p3, %p441_p0 }
  0x84   :  { %v127_v58 = vpop.permute.xlu1 %126 }
  0x85   :  { %vm129_vm5 = vcmp.eq.s32.totalorder %v127_v58, 1 }
  0x86   :  { %v131_v63 = vsel %vm129_vm5, %v548_v1, -1e+30 }
  0x89   :  { %v141_v59 = vpop.permute.xlu1 %140 }
  0x8a   :  { %vm145_vm6 = vcmp.eq.s32.totalorder %v141_v59, 1 }
  0x8b   :  { %v147_v2 = vsel %vm145_vm6, %v543_v0, -1e+30 }
  0x8d   :  { %v144_v61 = vpop.permute.xlu1 %143 }
  0x8e   :  { %vm146_vm7 = vcmp.eq.s32.totalorder %v144_v61, 1 }
  0x8f   :  { %v148_v3 = vsel %vm146_vm7, %v548_v1, -1e+30 }
  0x90   :  { %v149_v6 = vmax.f32 %v147_v2, %v148_v3 }
  0x91   :  { %v39_v60 = vpop.xlane.xlu0 %38 }
  0x92   :  { %v150_v4 = vrot.slane %v149_v6, 4  ;;  %v40_v13 = vmax.f32 %v39_v60, 1.0  ;;  %vm158_vm10 = vcmp.gt.f32.partialorder %v39_v60, 0.0 }
  0x94   :  { %v151_v9 = vmax.f32 %v149_v6, %v150_v4  ;;  %434 = vrcp.f32 %v40_v13 }
  0x96   :  { %v152_v11 = vrot.slane %v151_v9, 2 }
  0x98   :  { %v153_v14 = vmax.f32 %v151_v9, %v152_v11 }
  0x99   :  { %v124_v62 = vpop.permute.xlu0 %123 }
  0x9a   :  { %vm128_vm8 = vcmp.eq.s32.totalorder %v124_v62, 1  ;;  %v154_v16 = vrot.slane %v153_v14, 1 }
  0x9b   :  { %v130_v5 = vsel %vm128_vm8, %v543_v0, -1e+30 }
  0x9c   :  { %v132_v7 = vmax.f32 %v130_v5, %v131_v63  ;;  %v155_v18 = vmax.f32 %v153_v14, %v154_v16 }
  0x9e   :  { %v133_v8 = vrot.slane %v132_v7, 4  ;;  %v435_v0 = vpop.eup %434 }
  0xa0   :  { %v134_v10 = vmax.f32 %v132_v7, %v133_v8 }
  0xa2   :  { %v135_v12 = vrot.slane %v134_v10, 2 }
  0xa4   :  { %v136_v15 = vmax.f32 %v134_v10, %v135_v12 }
  0xa6   :  { %v137_v17 = vrot.slane %v136_v15, 1 }
  0xa8   :  { %v138_v19 = vmax.f32 %v136_v15, %v137_v17 }
  0xaa   :  { %v157_v1 = vsel %vm156_vm9, %v138_v19, %v155_v18 }
  0xab   :  { %v161_v23 = vsel %vm158_vm10, %v157_v1, 0.0 }
  0xda   :  { %v113_v20 = vpop.f32.mrb[0].mxu0 }
  0xdb   :  { %v117_v21 = vmul.f32 %v435_v0, %v113_v20  ;;  %v379_v22 = vpop.f32.mrb[1].mxu0 }
  0xdd   :  { %v162_v24 = vadd.f32 %v161_v23, %v117_v21 }
  0xdf   :  { %v163_v25 = vpack.c.bf16 %v162_v24, %v162_v24 }
  0xe1   :  { %397 = vmatmul.mubr.bf16.vlgmr.msra.gmra.mrb[0].mxu1 %v163_v25 }
 0x1b4   :  { %v229_v30 = vpop.f32.mrb[0].mxu1 }
 0x1b5   :  { %v230_v31 = vadd.f32 %v350_v29, %v229_v30  ;;  %v398_v32 = vpop.f32.mrb[1].mxu1 }
 0x1b6   :  { %v232_v33 = vpop.f32.mrb[2].mxu1 }
 0x1b7   :  { %v235_v34 = vpack.c.bf16 %v230_v31, %v230_v31  ;;  %v399_v35 = vpop.f32.mrb[3].mxu1 }
 0x1b9   :  { %417 = vmatmul.mubr.bf16.vlgmr.msra.gmra.mrb[4].mxu0 %v235_v34 }
 0x28c   :  { %v301_v37 = vpop.f32.mrb[4].mxu0 }
 0x28d   :  { %v302_v38 = vadd.f32 %v351_v36, %v301_v37  ;;  %v418_v39 = vpop.f32.mrb[5].mxu0 }
 0x28e   :  { %v304_v40 = vpop.f32.mrb[6].mxu0 }
 0x28f   :  { %v419_v41 = vpop.f32.mrb[7].mxu0  ;;  %v308_v42 = vsel %vm307_vm11, %v302_v38, -inf  ;;  %319 = vst.msk [vmem:[#allocation2] sm:$0x3] %vm307_vm11, %v302_v38 }
 0x290   :  { %309 = vmax.xlane.f32.xlu1 %v308_v42 }
 0x31d   :  { %v310_v43 = vpop.xlane.xlu1 %309 }
 0x31e   :  { %v311_v44 = vsub.f32 %v302_v38, %v310_v43 }
 0x320   :  { %v312_v45 = vmul.f32 1.442695, %v311_v44 }
 0x322   :  { %436 = vpow2.f32 %v312_v45 }
 0x32c   :  { %v437_v46 = vpop.eup %436 }
 0x32d   :  { %v314_v47 = vsel %vm307_vm11, %v437_v46, 0.0 }
 0x32e   :  { %315 = vadd.xlane.f32.xlu0 %v314_v47 }
 0x32f   :  { %451 = shalt.err (!%p448_p4)
}
 0x330   :  { %s452_s30 = scalar_lea.hbm %s724_s7, 32 }
 0x331   :  { %p453_p5 = scmp.ne.s32.totalorder %s724_s7, %s452_s30  ;;  %p456_p6 = scmp.lt.u32.totalorder %s452_s30, %s724_s7 }
 0x333   :  { %p458_p7 = pnand %p456_p6, %p453_p5 }
 0x335   :  { %461 = shalt.err (!%p458_p7)
}
 0x336   :  { %330 = dma.vmem_to_hbm [thread:$0]  %s328_s5, 32, %s724_s7, [#allocation3]  }
 0x337   :  { %s494_s1 = smov [#allocation4]  }
 0x338   :  { %s337_s2 = sshll.u32 %s494_s1, 4  ;;  %s338_s2 = int_to_ptr.vmem [resolvable:$true] %s337_s2 }
 0x339   :  { %s462_s14 = scalar_lea.vmem %s338_s2, 32  ;;  %p467_p9 = scmp.lt.s32.totalorder %s338_s2, %s338_s2 }
 0x33a   :  { %p463_p8 = scmp.ne.s32.totalorder %s338_s2, %s462_s14  ;;  %p468_p10 = scmp.lt.s32.totalorder %s462_s14, %s462_s14 }
 0x33c   :  { %p469_p11 = por %p468_p10, %p467_p9 }
 0x33e   :  { %p470_p12 = pnand %p469_p11, %p463_p8 }
 0x3bb   :  { %v316_v48 = vpop.xlane.xlu0 %315 }
 0x3bc   :  { %438 = vrcp.f32 %v316_v48 }
 0x3c6   :  { %v439_v49 = vpop.eup %438 }
 0x3c7   :  { %v318_v50 = vmul.f32 %v439_v49, %v437_v46 }
 0x3c9   :  { %320 = vst.msk [vmem:[#allocation4] sm:$0x3] %vm307_vm11, %v318_v50 }
 0x3ca   :  { %473 = shalt.err (!%p470_p12)
}
 0x3cb   :  { %s474_s7 = scalar_lea.hbm %s725_s8, 32 }
 0x3cc   :  { %p475_p13 = scmp.ne.s32.totalorder %s725_s8, %s474_s7  ;;  %p478_p0 = scmp.lt.u32.totalorder %s474_s7, %s725_s8 }
 0x3ce   :  { %p480_p1 = pnand %p478_p0, %p475_p13 }
 0x3d0   :  { %483 = shalt.err (!%p480_p1)
}
 0x3d1   :  { %340 = dma.vmem_to_hbm [thread:$0]  %s338_s2, 32, %s725_s8, [#allocation5]  }
 0x3d2   :  { %484 = dma.done.wait [#allocation3], 32  }
 0x3d3   :  { %485 = vsyncadd [#allocation3], 4294967264 }
 0x3d4   :  { %486 = dma.done.wait [#allocation5], 32  }
 0x3d5   :  { %487 = vsyncadd [#allocation5], 4294967264 }
 0x3d6   :  { %347 = vsyncpa [#allocation3], 1 }
 0x3d7   :  { %348 = vsyncpa [#allocation5], 1 }

</bundles_post_ra>
